<compile_context>
chip_gen: v5e
topology: v5e:2x2
jax: 0.10.0
libtpu: 0.0.40
codegen_flags: <defaults>
</compile_context>

<pallas_src>
import jax
import jax.numpy as jnp
from jax.experimental import pallas as pl
from jax.experimental.pallas import tpu as pltpu

HID = 128          # padded hidden width (real hidden sizes are 40 / 20 / 40)
LANE = 128         # TPU lane width


def _round_up(x, m):
    return ((x + m - 1) // m) * m


def _cdiv(a, b):
    return (a + b - 1) // b


def _pad_to(a, shape):
    return jnp.pad(a, [(0, s - d) for d, s in zip(a.shape, shape)])


def _vmem_capacity_bytes():
    try:
        return int(pltpu.get_tpu_info().vmem_capacity_bytes)
    except Exception:
        return 64 * 1024 * 1024          # conservative default (v7x physical)


def _resident_bytes(np_):
    """bf16 weights + f32 biases kept VMEM-resident (single copy)."""
    return (2 * np_ * HID * 2            # w1 (Np,128) + w4 (128,Np), bf16
            + 2 * HID * HID * 2          # w2, w3, bf16
            + 3 * HID * 4 + np_ * 4)     # b1..b3 and b4, f32


def plan_geometry(batch, num_movies):
    """Pick padded shapes, batch tile TM, grid and VMEM limit for this chip."""
    np_ = _round_up(num_movies, LANE)
    batch8 = _round_up(max(batch, 1), 8)

    capacity = _vmem_capacity_bytes()
    # Generous on 128-MiB chips (v5e/v6e), conservative on v7x (64 MiB).
    budget = min(capacity // 2, 96 * 1024 * 1024)
    tm_cap_gen = 2048 if budget >= 48 * 1024 * 1024 else 512
    usable = budget - (2 << 20)          # headroom for Mosaic internal scratch

    resident = _resident_bytes(np_)
    # Per-row streamed bytes: x + out, bf16, double-buffered, plus a generous
    # allowance for the live (TM, 128) f32 intermediates.
    per_row = 2 * (2 * np_ * 2) + 6 * HID * 4
    if resident + 8 * per_row > usable:
        # TODO(synk): add a second grid axis (K-tiles for fc1 / N-tiles for
        # fc4 with an f32 acc scratch) for num_movies too large to keep w1/w4
        # VMEM-resident on v7x's 64 MiB VMEM.
        raise ValueError(
            f"num_movies={num_movies} too large for the resident-weight "
            f"strategy (need >= {resident + 8 * per_row} B, budget {usable} B)")

    tm_cap = (usable - resident) // per_row
    tm_cap = max(8, min(tm_cap_gen, (tm_cap // 8) * 8))

    # Divisor-friendly TM (avoid up-to-TM dead padded rows); force >= 2 grid
    # steps when the batch allows so both v7x TensorCores get work.
    n_tiles = max(1, _cdiv(batch8, tm_cap))
    if batch8 >= 16:
        n_tiles = max(n_tiles, 2)
    tm = min(tm_cap, _round_up(_cdiv(batch8, n_tiles), 8))
    n_tiles = _cdiv(batch8, tm)
    batch_p = n_tiles * tm

    # Declared limit also covers the double-buffered-resident fallback path.
    need_worst = 2 * (2 * tm * np_ * 2) + 2 * resident + 6 * tm * HID * 4
    vmem_limit = int(min(budget, max(need_worst + (4 << 20), 16 << 20)))

    return dict(num_movies=num_movies, np_=np_, batch=batch, batch_p=batch_p,
                tm=tm, n_tiles=n_tiles, vmem_limit=vmem_limit)


def pack_params(params, geom):
    """One-time parameter packing: PyTorch (out,in) -> (in,out), zero-pad to
    lane-aligned shapes, bf16 weights / f32 biases.  Done once per parameter
    update, never on the forward path."""
    np_ = geom["np_"]
    w1 = _pad_to(params["w1"].T, (np_, HID)).astype(jnp.bfloat16)
    w2 = _pad_to(params["w2"].T, (HID, HID)).astype(jnp.bfloat16)
    w3 = _pad_to(params["w3"].T, (HID, HID)).astype(jnp.bfloat16)
    w4 = _pad_to(params["w4"].T, (HID, np_)).astype(jnp.bfloat16)
    b1 = _pad_to(params["b1"].reshape(1, -1), (1, HID)).astype(jnp.float32)
    b2 = _pad_to(params["b2"].reshape(1, -1), (1, HID)).astype(jnp.float32)
    b3 = _pad_to(params["b3"].reshape(1, -1), (1, HID)).astype(jnp.float32)
    b4 = _pad_to(params["b4"].reshape(1, -1), (1, np_)).astype(jnp.float32)
    return (w1, b1, w2, b2, w3, b3, w4, b4)


def pack_input(x, geom):
    """One-time input packing: zero-pad to (batch_p, Np) and cast to bf16.
    The SAE training set is static, so this is paid once, not per step."""
    return _pad_to(x, (geom["batch_p"], geom["np_"])).astype(jnp.bfloat16)


def sae_kernel(x_ref, w1_ref, b1_ref, w2_ref, b2_ref,
               w3_ref, b3_ref, w4_ref, b4_ref, o_ref):
    def sigmoid(z):
        # exp + approximate reciprocal both run on the EUP slot (no VPU div).
        return pl.reciprocal(1.0 + jnp.exp(-z), approx=True)

    x = x_ref[...]                                            # (TM, Np) bf16

    # fc1 + sigmoid   (padded w1 rows are zero => padded x lanes are inert)
    h = jnp.dot(x, w1_ref[...], preferred_element_type=jnp.float32) + b1_ref[...]
    h = sigmoid(h).astype(jnp.bfloat16)

    # fc2 + sigmoid   (padded hidden lanes hit zero rows of w2)
    h = jnp.dot(h, w2_ref[...], preferred_element_type=jnp.float32) + b2_ref[...]
    h = sigmoid(h).astype(jnp.bfloat16)

    # fc3 + sigmoid
    h = jnp.dot(h, w3_ref[...], preferred_element_type=jnp.float32) + b3_ref[...]
    h = sigmoid(h).astype(jnp.bfloat16)

    # fc4 (no activation), bf16 writeback
    out = jnp.dot(h, w4_ref[...], preferred_element_type=jnp.float32) + b4_ref[...]
    o_ref[...] = out.astype(o_ref.dtype)


def _pallas_forward(xp, packed, geom, single_buffer_weights):
    np_, tm = geom["np_"], geom["tm"]
    n_tiles, batch_p = geom["n_tiles"], geom["batch_p"]
    w1, b1, w2, b2, w3, b3, w4, b4 = packed

    def resident(shape):
        # Constant index_map => stays VMEM-resident across grid steps; no need
        # for double buffering.
        if single_buffer_weights:
            return pl.BlockSpec(shape, lambda i: (0,) * len(shape),
                                pipeline_mode=pl.Buffered(1))
        return pl.BlockSpec(shape, lambda i: (0,) * len(shape))

    stream_in = pl.BlockSpec((tm, np_), lambda i: (i, 0))
    stream_out = pl.BlockSpec((tm, np_), lambda i: (i, 0))

    flops = 2 * batch_p * (np_ * HID + 2 * HID * HID + HID * np_)
    bytes_accessed = (xp.size * 2 + batch_p * np_ * 2
                      + (w1.size + w2.size + w3.size + w4.size) * 2
                      + (b1.size + b2.size + b3.size + b4.size) * 4)
    cost = pl.CostEstimate(flops=int(flops),
                           transcendentals=int(6 * batch_p * HID),
                           bytes_accessed=int(bytes_accessed))

    return pl.pallas_call(
        sae_kernel,
        out_shape=jax.ShapeDtypeStruct((batch_p, np_), jnp.bfloat16),
        grid=(n_tiles,),
        in_specs=[stream_in,
                  resident(w1.shape), resident(b1.shape),
                  resident(w2.shape), resident(b2.shape),
                  resident(w3.shape), resident(b3.shape),
                  resident(w4.shape), resident(b4.shape)],
        out_specs=stream_out,
        compiler_params=pltpu.CompilerParams(
            dimension_semantics=("parallel",),
            vmem_limit_bytes=geom["vmem_limit"]),
        cost_estimate=cost,
    )(xp, w1, b1, w2, b2, w3, b3, w4, b4)


def sae_forward(xp, packed, geom):
    """SAE forward pass.  Returns the PADDED (batch_p, Np) bf16 output; slice
    [:batch, :num_movies] only if the consumer truly needs the unpadded view
    (that slice is a full extra HBM pass over the output)."""
    try:
        return _pallas_forward(xp, packed, geom, single_buffer_weights=True)
    except Exception:
        # pl.Buffered(1) not supported by this jax version -> default
        # (double-buffered) resident weights; still within vmem_limit.
        return _pallas_forward(xp, packed, geom, single_buffer_weights=False)


def init_params(key, num_movies):
    """Deterministic init mimicking nn.Linear shapes: W (out, in), b (out,)."""
    ks = jax.random.split(key, 8)

    def linear(kw, kb, in_f, out_f):
        bound = 1.0 / jnp.sqrt(in_f)
        w = jax.random.uniform(kw, (out_f, in_f), jnp.float32, -bound, bound)
        b = jax.random.uniform(kb, (out_f,), jnp.float32, -bound, bound)
        return w, b

    w1, b1 = linear(ks[0], ks[1], num_movies, 40)
    w2, b2 = linear(ks[2], ks[3], 40, 20)
    w3, b3 = linear(ks[4], ks[5], 20, 40)
    w4, b4 = linear(ks[6], ks[7], 40, num_movies)
    return {"w1": w1, "b1": b1, "w2": w2, "b2": b2,
            "w3": w3, "b3": b3, "w4": w4, "b4": b4}


def sae_forward_ref(x, p):
    """Pure-JAX f32 reference matching PyTorch semantics."""
    h = jax.nn.sigmoid(x @ p["w1"].T + p["b1"])
    h = jax.nn.sigmoid(h @ p["w2"].T + p["b2"])
    h = jax.nn.sigmoid(h @ p["w3"].T + p["b3"])
    return h @ p["w4"].T + p["b4"]


if __name__ == "__main__":
    key = jax.random.PRNGKey(0)
    k_x, k_p = jax.random.split(key)

    batch = 13          # exercises batch padding (-> 16) and >= 2 grid steps
    num_movies = 200    # stand-in for training_set.shape[1]; pads to 256 lanes

    # Ratings-like input in [0, 5]
    x = jax.random.uniform(k_x, (batch, num_movies), jnp.float32, 0.0, 5.0)
    params = init_params(k_p, num_movies)

    geom = plan_geometry(batch, num_movies)
    packed = pack_params(params, geom)     # one-time parameter packing
    xp = pack_input(x, geom)               # one-time input packing (static data)

    out_p = jax.block_until_ready(sae_forward(xp, packed, geom))
    assert out_p.shape == (geom["batch_p"], geom["np_"])
    assert out_p.dtype == jnp.bfloat16

    # Test-only unpad + upcast (NOT part of the forward path).
    out = out_p[:batch, :num_movies].astype(jnp.float32)
    ref = sae_forward_ref(x, params)
    err = float(jnp.max(jnp.abs(out - ref)))
    # bf16 inputs/weights/output with f32 MXU accumulation => loose tolerance.
    assert jnp.allclose(out, ref, atol=6e-2, rtol=6e-2), err

    print("KERNEL_OK")
</pallas_src>

<mosaic_0001>
module attributes {stable_mosaic.version = 11 : i64} {
  func.func @sae_kernel(%arg0: i32, %arg1: memref<8x256xbf16, #tpu.memory_space<vmem>>, %arg2: memref<256x128xbf16, #tpu.memory_space<vmem>>, %arg3: memref<1x128xf32, #tpu.memory_space<vmem>>, %arg4: memref<128x128xbf16, #tpu.memory_space<vmem>>, %arg5: memref<1x128xf32, #tpu.memory_space<vmem>>, %arg6: memref<128x128xbf16, #tpu.memory_space<vmem>>, %arg7: memref<1x128xf32, #tpu.memory_space<vmem>>, %arg8: memref<128x256xbf16, #tpu.memory_space<vmem>>, %arg9: memref<1x256xf32, #tpu.memory_space<vmem>>, %arg10: memref<8x256xbf16, #tpu.memory_space<vmem>>) attributes {dimension_semantics = [#tpu.dimension_semantics<parallel>], iteration_bounds = array<i64: 2>, scalar_prefetch = 0 : i64, scratch_operands = 0 : i64, tpu.core_type = #tpu.core_type<tc>, window_params = [{transform_indices = @transform_0, window_bounds = array<i64: 8, 256>}, {pipeline_mode = #tpu.pipeline_mode<synchronous>, transform_indices = @transform_1, window_bounds = array<i64: 256, 128>}, {pipeline_mode = #tpu.pipeline_mode<synchronous>, transform_indices = @transform_2, window_bounds = array<i64: 1, 128>}, {pipeline_mode = #tpu.pipeline_mode<synchronous>, transform_indices = @transform_3, window_bounds = array<i64: 128, 128>}, {pipeline_mode = #tpu.pipeline_mode<synchronous>, transform_indices = @transform_4, window_bounds = array<i64: 1, 128>}, {pipeline_mode = #tpu.pipeline_mode<synchronous>, transform_indices = @transform_5, window_bounds = array<i64: 128, 128>}, {pipeline_mode = #tpu.pipeline_mode<synchronous>, transform_indices = @transform_6, window_bounds = array<i64: 1, 128>}, {pipeline_mode = #tpu.pipeline_mode<synchronous>, transform_indices = @transform_7, window_bounds = array<i64: 128, 256>}, {pipeline_mode = #tpu.pipeline_mode<synchronous>, transform_indices = @transform_8, window_bounds = array<i64: 1, 256>}, {transform_indices = @transform_9, window_bounds = array<i64: 8, 256>}]} {
    %c0 = arith.constant 0 : index
    %c0_0 = arith.constant 0 : index
    %0 = vector.load %arg1[%c0, %c0_0] : memref<8x256xbf16, #tpu.memory_space<vmem>>, vector<8x256xbf16>
    %c0_1 = arith.constant 0 : index
    %c0_2 = arith.constant 0 : index
    %1 = vector.load %arg2[%c0_1, %c0_2] : memref<256x128xbf16, #tpu.memory_space<vmem>>, vector<256x128xbf16>
    %cst = arith.constant dense<0.000000e+00> : vector<8x128xf32>
    %2 = tpu.matmul %0, %1, %cst {dimension_numbers = #tpu.dot_dimension_numbers<[1], [0], [0], [1], [0, 0, 1, 1], [], []>} : vector<8x256xbf16>, vector<256x128xbf16>, vector<8x128xf32> -> vector<8x128xf32>
    %c0_3 = arith.constant 0 : index
    %c0_4 = arith.constant 0 : index
    %3 = vector.load %arg3[%c0_3, %c0_4] : memref<1x128xf32, #tpu.memory_space<vmem>>, vector<1x128xf32>
    %4 = vector.broadcast %3 : vector<1x128xf32> to vector<8x128xf32>
    %5 = arith.addf %2, %4 : vector<8x128xf32>
    %cst_5 = arith.constant 0.000000e+00 : f32
    %6 = vector.broadcast %cst_5 : f32 to vector<8x128xf32>
    %7 = arith.subf %6, %5 : vector<8x128xf32>
    %8 = math.exp %7 : vector<8x128xf32>
    %cst_6 = arith.constant 1.000000e+00 : f32
    %9 = vector.broadcast %cst_6 : f32 to vector<8x128xf32>
    %10 = arith.addf %9, %8 : vector<8x128xf32>
    %11 = tpu.reciprocal %10 {approx = true} : vector<8x128xf32> -> vector<8x128xf32>
    %12 = arith.truncf %11 : vector<8x128xf32> to vector<8x128xbf16>
    %c0_7 = arith.constant 0 : index
    %c0_8 = arith.constant 0 : index
    %13 = vector.load %arg4[%c0_7, %c0_8] : memref<128x128xbf16, #tpu.memory_space<vmem>>, vector<128x128xbf16>
    %cst_9 = arith.constant dense<0.000000e+00> : vector<8x128xf32>
    %14 = tpu.matmul %12, %13, %cst_9 {dimension_numbers = #tpu.dot_dimension_numbers<[1], [0], [0], [1], [0, 0, 1, 1], [], []>} : vector<8x128xbf16>, vector<128x128xbf16>, vector<8x128xf32> -> vector<8x128xf32>
    %c0_10 = arith.constant 0 : index
    %c0_11 = arith.constant 0 : index
    %15 = vector.load %arg5[%c0_10, %c0_11] : memref<1x128xf32, #tpu.memory_space<vmem>>, vector<1x128xf32>
    %16 = vector.broadcast %15 : vector<1x128xf32> to vector<8x128xf32>
    %17 = arith.addf %14, %16 : vector<8x128xf32>
    %cst_12 = arith.constant 0.000000e+00 : f32
    %18 = vector.broadcast %cst_12 : f32 to vector<8x128xf32>
    %19 = arith.subf %18, %17 : vector<8x128xf32>
    %20 = math.exp %19 : vector<8x128xf32>
    %cst_13 = arith.constant 1.000000e+00 : f32
    %21 = vector.broadcast %cst_13 : f32 to vector<8x128xf32>
    %22 = arith.addf %21, %20 : vector<8x128xf32>
    %23 = tpu.reciprocal %22 {approx = true} : vector<8x128xf32> -> vector<8x128xf32>
    %24 = arith.truncf %23 : vector<8x128xf32> to vector<8x128xbf16>
    %c0_14 = arith.constant 0 : index
    %c0_15 = arith.constant 0 : index
    %25 = vector.load %arg6[%c0_14, %c0_15] : memref<128x128xbf16, #tpu.memory_space<vmem>>, vector<128x128xbf16>
    %cst_16 = arith.constant dense<0.000000e+00> : vector<8x128xf32>
    %26 = tpu.matmul %24, %25, %cst_16 {dimension_numbers = #tpu.dot_dimension_numbers<[1], [0], [0], [1], [0, 0, 1, 1], [], []>} : vector<8x128xbf16>, vector<128x128xbf16>, vector<8x128xf32> -> vector<8x128xf32>
    %c0_17 = arith.constant 0 : index
    %c0_18 = arith.constant 0 : index
    %27 = vector.load %arg7[%c0_17, %c0_18] : memref<1x128xf32, #tpu.memory_space<vmem>>, vector<1x128xf32>
    %28 = vector.broadcast %27 : vector<1x128xf32> to vector<8x128xf32>
    %29 = arith.addf %26, %28 : vector<8x128xf32>
    %cst_19 = arith.constant 0.000000e+00 : f32
    %30 = vector.broadcast %cst_19 : f32 to vector<8x128xf32>
    %31 = arith.subf %30, %29 : vector<8x128xf32>
    %32 = math.exp %31 : vector<8x128xf32>
    %cst_20 = arith.constant 1.000000e+00 : f32
    %33 = vector.broadcast %cst_20 : f32 to vector<8x128xf32>
    %34 = arith.addf %33, %32 : vector<8x128xf32>
    %35 = tpu.reciprocal %34 {approx = true} : vector<8x128xf32> -> vector<8x128xf32>
    %36 = arith.truncf %35 : vector<8x128xf32> to vector<8x128xbf16>
    %c0_21 = arith.constant 0 : index
    %c0_22 = arith.constant 0 : index
    %37 = vector.load %arg8[%c0_21, %c0_22] : memref<128x256xbf16, #tpu.memory_space<vmem>>, vector<128x256xbf16>
    %cst_23 = arith.constant dense<0.000000e+00> : vector<8x256xf32>
    %38 = tpu.matmul %36, %37, %cst_23 {dimension_numbers = #tpu.dot_dimension_numbers<[1], [0], [0], [1], [0, 0, 1, 1], [], []>} : vector<8x128xbf16>, vector<128x256xbf16>, vector<8x256xf32> -> vector<8x256xf32>
    %c0_24 = arith.constant 0 : index
    %c0_25 = arith.constant 0 : index
    %39 = vector.load %arg9[%c0_24, %c0_25] : memref<1x256xf32, #tpu.memory_space<vmem>>, vector<1x256xf32>
    %40 = vector.broadcast %39 : vector<1x256xf32> to vector<8x256xf32>
    %41 = arith.addf %38, %40 : vector<8x256xf32>
    %42 = arith.truncf %41 : vector<8x256xf32> to vector<8x256xbf16>
    %c0_26 = arith.constant 0 : index
    %c0_27 = arith.constant 0 : index
    %43 = vector.load %arg10[%c0_26, %c0_27] : memref<8x256xbf16, #tpu.memory_space<vmem>>, vector<8x256xbf16>
    tpu.vector_store %arg10[%c0_26, %c0_27], %42 {strides = array<i32>} : memref<8x256xbf16, #tpu.memory_space<vmem>>, vector<8x256xbf16>,
    return
  }
  func.func @transform_0(%arg0: i32) -> (i32, i32) {
    %c0_i32 = arith.constant 0 : i32
    %c0_i32_0 = arith.constant 0 : i32
    return %arg0, %c0_i32 : i32, i32
  }
  func.func @transform_1(%arg0: i32) -> (i32, i32) {
    %c0_i32 = arith.constant 0 : i32
    %c0_i32_0 = arith.constant 0 : i32
    %c0_i32_1 = arith.constant 0 : i32
    return %c0_i32, %c0_i32_0 : i32, i32
  }
  func.func @transform_2(%arg0: i32) -> (i32, i32) {
    %c0_i32 = arith.constant 0 : i32
    %c0_i32_0 = arith.constant 0 : i32
    %c0_i32_1 = arith.constant 0 : i32
    return %c0_i32, %c0_i32_0 : i32, i32
  }
  func.func @transform_3(%arg0: i32) -> (i32, i32) {
    %c0_i32 = arith.constant 0 : i32
    %c0_i32_0 = arith.constant 0 : i32
    %c0_i32_1 = arith.constant 0 : i32
    return %c0_i32, %c0_i32_0 : i32, i32
  }
  func.func @transform_4(%arg0: i32) -> (i32, i32) {
    %c0_i32 = arith.constant 0 : i32
    %c0_i32_0 = arith.constant 0 : i32
    %c0_i32_1 = arith.constant 0 : i32
    return %c0_i32, %c0_i32_0 : i32, i32
  }
  func.func @transform_5(%arg0: i32) -> (i32, i32) {
    %c0_i32 = arith.constant 0 : i32
    %c0_i32_0 = arith.constant 0 : i32
    %c0_i32_1 = arith.constant 0 : i32
    return %c0_i32, %c0_i32_0 : i32, i32
  }
  func.func @transform_6(%arg0: i32) -> (i32, i32) {
    %c0_i32 = arith.constant 0 : i32
    %c0_i32_0 = arith.constant 0 : i32
    %c0_i32_1 = arith.constant 0 : i32
    return %c0_i32, %c0_i32_0 : i32, i32
  }
  func.func @transform_7(%arg0: i32) -> (i32, i32) {
    %c0_i32 = arith.constant 0 : i32
    %c0_i32_0 = arith.constant 0 : i32
    %c0_i32_1 = arith.constant 0 : i32
    return %c0_i32, %c0_i32_0 : i32, i32
  }
  func.func @transform_8(%arg0: i32) -> (i32, i32) {
    %c0_i32 = arith.constant 0 : i32
    %c0_i32_0 = arith.constant 0 : i32
    %c0_i32_1 = arith.constant 0 : i32
    return %c0_i32, %c0_i32_0 : i32, i32
  }
  func.func @transform_9(%arg0: i32) -> (i32, i32) {
    %c0_i32 = arith.constant 0 : i32
    %c0_i32_0 = arith.constant 0 : i32
    return %arg0, %c0_i32 : i32, i32
  }
}

module attributes {stable_mosaic.version = 11 : i64} {
  func.func @sae_kernel(%arg0: i32, %arg1: memref<8x256xbf16, #tpu.memory_space<vmem>>, %arg2: memref<256x128xbf16, #tpu.memory_space<vmem>>, %arg3: memref<1x128xf32, #tpu.memory_space<vmem>>, %arg4: memref<128x128xbf16, #tpu.memory_space<vmem>>, %arg5: memref<1x128xf32, #tpu.memory_space<vmem>>, %arg6: memref<128x128xbf16, #tpu.memory_space<vmem>>, %arg7: memref<1x128xf32, #tpu.memory_space<vmem>>, %arg8: memref<128x256xbf16, #tpu.memory_space<vmem>>, %arg9: memref<1x256xf32, #tpu.memory_space<vmem>>, %arg10: memref<8x256xbf16, #tpu.memory_space<vmem>>) attributes {dimension_semantics = [#tpu.dimension_semantics<parallel>], iteration_bounds = array<i64: 2>, scalar_prefetch = 0 : i64, scratch_operands = 0 : i64, tpu.core_type = #tpu.core_type<tc>, window_params = [{transform_indices = @transform_0, window_bounds = array<i64: 8, 256>}, {pipeline_mode = #tpu.pipeline_mode<synchronous>, transform_indices = @transform_1, window_bounds = array<i64: 256, 128>}, {pipeline_mode = #tpu.pipeline_mode<synchronous>, transform_indices = @transform_2, window_bounds = array<i64: 1, 128>}, {pipeline_mode = #tpu.pipeline_mode<synchronous>, transform_indices = @transform_3, window_bounds = array<i64: 128, 128>}, {pipeline_mode = #tpu.pipeline_mode<synchronous>, transform_indices = @transform_4, window_bounds = array<i64: 1, 128>}, {pipeline_mode = #tpu.pipeline_mode<synchronous>, transform_indices = @transform_5, window_bounds = array<i64: 128, 128>}, {pipeline_mode = #tpu.pipeline_mode<synchronous>, transform_indices = @transform_6, window_bounds = array<i64: 1, 128>}, {pipeline_mode = #tpu.pipeline_mode<synchronous>, transform_indices = @transform_7, window_bounds = array<i64: 128, 256>}, {pipeline_mode = #tpu.pipeline_mode<synchronous>, transform_indices = @transform_8, window_bounds = array<i64: 1, 256>}, {transform_indices = @transform_9, window_bounds = array<i64: 8, 256>}]} {
    %c0 = arith.constant 0 : index
    %c0_0 = arith.constant 0 : index
    %0 = vector.load %arg1[%c0, %c0_0] : memref<8x256xbf16, #tpu.memory_space<vmem>>, vector<8x256xbf16>
    %c0_1 = arith.constant 0 : index
    %c0_2 = arith.constant 0 : index
    %1 = vector.load %arg2[%c0_1, %c0_2] : memref<256x128xbf16, #tpu.memory_space<vmem>>, vector<256x128xbf16>
    %cst = arith.constant dense<0.000000e+00> : vector<8x128xf32>
    %2 = tpu.matmul %0, %1, %cst {dimension_numbers = #tpu.dot_dimension_numbers<[1], [0], [0], [1], [0, 0, 1, 1], [], []>} : vector<8x256xbf16>, vector<256x128xbf16>, vector<8x128xf32> -> vector<8x128xf32>
    %c0_3 = arith.constant 0 : index
    %c0_4 = arith.constant 0 : index
    %3 = vector.load %arg3[%c0_3, %c0_4] : memref<1x128xf32, #tpu.memory_space<vmem>>, vector<1x128xf32>
    %4 = vector.broadcast %3 : vector<1x128xf32> to vector<8x128xf32>
    %5 = arith.addf %2, %4 : vector<8x128xf32>
    %cst_5 = arith.constant 0.000000e+00 : f32
    %6 = vector.broadcast %cst_5 : f32 to vector<8x128xf32>
    %7 = arith.subf %6, %5 : vector<8x128xf32>
    %8 = math.exp %7 : vector<8x128xf32>
    %cst_6 = arith.constant 1.000000e+00 : f32
    %9 = vector.broadcast %cst_6 : f32 to vector<8x128xf32>
    %10 = arith.addf %9, %8 : vector<8x128xf32>
    %11 = tpu.reciprocal %10 {approx = true} : vector<8x128xf32> -> vector<8x128xf32>
    %12 = arith.truncf %11 : vector<8x128xf32> to vector<8x128xbf16>
    %c0_7 = arith.constant 0 : index
    %c0_8 = arith.constant 0 : index
    %13 = vector.load %arg4[%c0_7, %c0_8] : memref<128x128xbf16, #tpu.memory_space<vmem>>, vector<128x128xbf16>
    %cst_9 = arith.constant dense<0.000000e+00> : vector<8x128xf32>
    %14 = tpu.matmul %12, %13, %cst_9 {dimension_numbers = #tpu.dot_dimension_numbers<[1], [0], [0], [1], [0, 0, 1, 1], [], []>} : vector<8x128xbf16>, vector<128x128xbf16>, vector<8x128xf32> -> vector<8x128xf32>
    %c0_10 = arith.constant 0 : index
    %c0_11 = arith.constant 0 : index
    %15 = vector.load %arg5[%c0_10, %c0_11] : memref<1x128xf32, #tpu.memory_space<vmem>>, vector<1x128xf32>
    %16 = vector.broadcast %15 : vector<1x128xf32> to vector<8x128xf32>
    %17 = arith.addf %14, %16 : vector<8x128xf32>
    %cst_12 = arith.constant 0.000000e+00 : f32
    %18 = vector.broadcast %cst_12 : f32 to vector<8x128xf32>
    %19 = arith.subf %18, %17 : vector<8x128xf32>
    %20 = math.exp %19 : vector<8x128xf32>
    %cst_13 = arith.constant 1.000000e+00 : f32
    %21 = vector.broadcast %cst_13 : f32 to vector<8x128xf32>
    %22 = arith.addf %21, %20 : vector<8x128xf32>
    %23 = tpu.reciprocal %22 {approx = true} : vector<8x128xf32> -> vector<8x128xf32>
    %24 = arith.truncf %23 : vector<8x128xf32> to vector<8x128xbf16>
    %c0_14 = arith.constant 0 : index
    %c0_15 = arith.constant 0 : index
    %25 = vector.load %arg6[%c0_14, %c0_15] : memref<128x128xbf16, #tpu.memory_space<vmem>>, vector<128x128xbf16>
    %cst_16 = arith.constant dense<0.000000e+00> : vector<8x128xf32>
    %26 = tpu.matmul %24, %25, %cst_16 {dimension_numbers = #tpu.dot_dimension_numbers<[1], [0], [0], [1], [0, 0, 1, 1], [], []>} : vector<8x128xbf16>, vector<128x128xbf16>, vector<8x128xf32> -> vector<8x128xf32>
    %c0_17 = arith.constant 0 : index
    %c0_18 = arith.constant 0 : index
    %27 = vector.load %arg7[%c0_17, %c0_18] : memref<1x128xf32, #tpu.memory_space<vmem>>, vector<1x128xf32>
    %28 = vector.broadcast %27 : vector<1x128xf32> to vector<8x128xf32>
    %29 = arith.addf %26, %28 : vector<8x128xf32>
    %cst_19 = arith.constant 0.000000e+00 : f32
    %30 = vector.broadcast %cst_19 : f32 to vector<8x128xf32>
    %31 = arith.subf %30, %29 : vector<8x128xf32>
    %32 = math.exp %31 : vector<8x128xf32>
    %cst_20 = arith.constant 1.000000e+00 : f32
    %33 = vector.broadcast %cst_20 : f32 to vector<8x128xf32>
    %34 = arith.addf %33, %32 : vector<8x128xf32>
    %35 = tpu.reciprocal %34 {approx = true} : vector<8x128xf32> -> vector<8x128xf32>
    %36 = arith.truncf %35 : vector<8x128xf32> to vector<8x128xbf16>
    %c0_21 = arith.constant 0 : index
    %c0_22 = arith.constant 0 : index
    %37 = vector.load %arg8[%c0_21, %c0_22] : memref<128x256xbf16, #tpu.memory_space<vmem>>, vector<128x256xbf16>
    %cst_23 = arith.constant dense<0.000000e+00> : vector<8x256xf32>
    %38 = tpu.matmul %36, %37, %cst_23 {dimension_numbers = #tpu.dot_dimension_numbers<[1], [0], [0], [1], [0, 0, 1, 1], [], []>} : vector<8x128xbf16>, vector<128x256xbf16>, vector<8x256xf32> -> vector<8x256xf32>
    %c0_24 = arith.constant 0 : index
    %c0_25 = arith.constant 0 : index
    %39 = vector.load %arg9[%c0_24, %c0_25] : memref<1x256xf32, #tpu.memory_space<vmem>>, vector<1x256xf32>
    %40 = vector.broadcast %39 : vector<1x256xf32> to vector<8x256xf32>
    %41 = arith.addf %38, %40 : vector<8x256xf32>
    %42 = arith.truncf %41 : vector<8x256xf32> to vector<8x256xbf16>
    %c0_26 = arith.constant 0 : index
    %c0_27 = arith.constant 0 : index
    %43 = vector.load %arg10[%c0_26, %c0_27] : memref<8x256xbf16, #tpu.memory_space<vmem>>, vector<8x256xbf16>
    tpu.vector_store %arg10[%c0_26, %c0_27], %42 {strides = array<i32>} : memref<8x256xbf16, #tpu.memory_space<vmem>>, vector<8x256xbf16>,
    return
  }
  func.func @transform_0(%arg0: i32) -> (i32, i32) {
    %c0_i32 = arith.constant 0 : i32
    %c0_i32_0 = arith.constant 0 : i32
    return %arg0, %c0_i32 : i32, i32
  }
  func.func @transform_1(%arg0: i32) -> (i32, i32) {
    %c0_i32 = arith.constant 0 : i32
    %c0_i32_0 = arith.constant 0 : i32
    %c0_i32_1 = arith.constant 0 : i32
    return %c0_i32, %c0_i32_0 : i32, i32
  }
  func.func @transform_2(%arg0: i32) -> (i32, i32) {
    %c0_i32 = arith.constant 0 : i32
    %c0_i32_0 = arith.constant 0 : i32
    %c0_i32_1 = arith.constant 0 : i32
    return %c0_i32, %c0_i32_0 : i32, i32
  }
  func.func @transform_3(%arg0: i32) -> (i32, i32) {
    %c0_i32 = arith.constant 0 : i32
    %c0_i32_0 = arith.constant 0 : i32
    %c0_i32_1 = arith.constant 0 : i32
    return %c0_i32, %c0_i32_0 : i32, i32
  }
  func.func @transform_4(%arg0: i32) -> (i32, i32) {
    %c0_i32 = arith.constant 0 : i32
    %c0_i32_0 = arith.constant 0 : i32
    %c0_i32_1 = arith.constant 0 : i32
    return %c0_i32, %c0_i32_0 : i32, i32
  }
  func.func @transform_5(%arg0: i32) -> (i32, i32) {
    %c0_i32 = arith.constant 0 : i32
    %c0_i32_0 = arith.constant 0 : i32
    %c0_i32_1 = arith.constant 0 : i32
    return %c0_i32, %c0_i32_0 : i32, i32
  }
  func.func @transform_6(%arg0: i32) -> (i32, i32) {
    %c0_i32 = arith.constant 0 : i32
    %c0_i32_0 = arith.constant 0 : i32
    %c0_i32_1 = arith.constant 0 : i32
    return %c0_i32, %c0_i32_0 : i32, i32
  }
  func.func @transform_7(%arg0: i32) -> (i32, i32) {
    %c0_i32 = arith.constant 0 : i32
    %c0_i32_0 = arith.constant 0 : i32
    %c0_i32_1 = arith.constant 0 : i32
    return %c0_i32, %c0_i32_0 : i32, i32
  }
  func.func @transform_8(%arg0: i32) -> (i32, i32) {
    %c0_i32 = arith.constant 0 : i32
    %c0_i32_0 = arith.constant 0 : i32
    %c0_i32_1 = arith.constant 0 : i32
    return %c0_i32, %c0_i32_0 : i32, i32
  }
  func.func @transform_9(%arg0: i32) -> (i32, i32) {
    %c0_i32 = arith.constant 0 : i32
    %c0_i32_0 = arith.constant 0 : i32
    return %arg0, %c0_i32 : i32, i32
  }
}

</mosaic_0001>

<bundles_post_ra>
// kernel: tpu_custom_call.1
= control target key start
LH: loop header
LB: loop body
LE: loop exit
PB: predicated region body
PF: predicated region fallthrough
CT: control target
= control target key end

     0   :  { %s1930_s0 = inlined_call_operand.hbm [shape: bf16[16,256], index: 0, kind: input, shape index: {}]   ;;  %s1931_s1 = inlined_call_operand.hbm [shape: bf16[256,128], index: 1, kind: input, shape index: {}]   ;;  %s1932_s2 = inlined_call_operand.vmem [shape: f32[1,128], index: 2, kind: input, shape index: {}]   ;;  %s1933_s3 = inlined_call_operand.hbm [shape: bf16[128,128], index: 3, kind: input, shape index: {}]   ;;  %s1934_s4 = inlined_call_operand.hbm [shape: f32[1,128], index: 4, kind: input, shape index: {}]   ;;  %s1935_s5 = inlined_call_operand.hbm [shape: bf16[128,128], index: 5, kind: input, shape index: {}]   ;;  %s1936_s6 = inlined_call_operand.vmem [shape: f32[1,128], index: 6, kind: input, shape index: {}]   ;;  %s1937_s7 = inlined_call_operand.hbm [shape: bf16[128,256], index: 7, kind: input, shape index: {}]   ;;  %s1938_s8 = inlined_call_operand.vmem [shape: f32[1,256], index: 8, kind: input, shape index: {}]   ;;  %s1939_s9 = inlined_call_operand.hbm [shape: bf16[16,256], index: 9, kind: output, shape index: {}]  }
   0x1   :  { %1940 = sst [smem:[#allocation19_spill]] %s1931_s1 }
   0x2   :  { %1941 = sst [smem:[#allocation20_spill]] %s1933_s3 }
   0x3   :  { %1942 = sst [smem:[#allocation21_spill]] %s1934_s4 }
   0x4   :  { %14 = vsyncpa [#allocation3], 0 }
   0x5   :  { %16 = vsyncpa [#allocation3 + $0x1], 0 }
   0x6   :  { %17 = vsyncpa [#allocation6], 0 }
   0x7   :  { %18 = vsyncpa [#allocation9], 0 }
   0x8   :  { %19 = vsyncpa [#allocation12], 0 }
   0x9   :  { %20 = vsyncpa [#allocation4], 0 }
   0xa   :  { %22 = vsyncpa [#allocation4 + $0x1], 0  ;;  %s1744_s30 = smov 0   ;;  %s1746_s10 = smov 0  }
   0xb   :  { %s1748_s11 = smov 0   ;;  %s1750_s12 = smov 0  }
   0xc LB: > { %s1943_s1 = sld [smem:[#allocation19_spill]]  ;;  %s1768_s16 = sadd.s32 4294967295, %s1683_s12   ;;  %s1683_s12 = sphi %s1750_s12, %s1956_s12   ;;  %s1679_s11 = sphi %s1748_s11, %s1955_s11   ;;  %s1675_s10 = sphi %s1746_s10, %s1954_s10   ;;  %s1671_s30 = sphi %s1744_s30, %s1953_s30  }
   0xd   : > { %p1044_p0 = scmp.ge.s32.totalorder %s1683_s12, 1  ;;  %p49_p1 = scmp.eq.s32.totalorder %s1768_s16, 0 }
   0xe   : > { %p253_p2 = scmp.lt.s32.totalorder %s1683_s12, 3  ;;  %s1685_s18 = smov [#allocation5]  }
   0xf   : > { %s266_s19 = sshll.u32 %s1685_s18, 4  ;;  %s1945_s4 = sld [smem:[#allocation21_spill]]  ;;  %s267_s19 = int_to_ptr.vmem [resolvable:$true] %s266_s19 }
  0x10   : > { %p1773_p3 = pnand %p1044_p0, %p253_p2  ;;  %s1947_s3 = sld [smem:[#allocation20_spill]] }
  0x11   : > { %s1686_s27 = smov [#allocation8]   ;;  %s1687_s29 = smov 64  }
  0x12   : > { %s264_s15 = sshll.u32 %s1943_s1, 4  ;;  %p1333_p4 = pneg %p1773_p3  ;;  %s265_s15 = int_to_ptr.hbm [resolvable:$true] %s264_s15 }
  0x13   : > { %s298_s28 = sshll.u32 %s1686_s27, 4  ;;  %s1688_s13 = smov 4   ;;  %s299_s28 = int_to_ptr.vmem [resolvable:$true] %s298_s28 }
  0x14   : > { %p1785_p6 = pnand %p1333_p4, %p49_p1  ;;  %s307_s20 = sshll.u32 %s1935_s5, 4  ;;  %s308_s20 = int_to_ptr.hbm [resolvable:$true] %s307_s20 }
  0x15   : > { %s296_s22 = sshll.u32 %s1945_s4, 4  ;;  %s1689_s21 = smov [#allocation7]   ;;  %s297_s22 = int_to_ptr.hbm [resolvable:$true] %s296_s22 }
  0x16   : > { %s281_s26 = sshll.u32 %s1947_s3, 4  ;;  %s283_s1 = sshll.u32 %s1689_s21, 4  ;;  %s282_s26 = int_to_ptr.hbm [resolvable:$true] %s281_s26  ;;  %s284_s1 = int_to_ptr.vmem [resolvable:$true] %s283_s1 }
  0x17   : > { %1336 = dma.hbm_to_vmem [thread:$0]  (!%p1785_p6), %s265_s15, 2048, %s267_s19, [#allocation6], %s1687_s29, %s1687_s29, %s1688_s13  }
  0x18   : > { %1342 = dma.hbm_to_vmem [thread:$0]  (!%p1785_p6), %s297_s22, 16, %s299_s28, [#allocation9]  }
  0x19   : > { %1339 = dma.hbm_to_vmem [thread:$0]  (!%p1785_p6), %s282_s26, 1024, %s284_s1, [#allocation6], %s1687_s29, %s1687_s29, %s1688_s13  }
  0x1a   : > { %s1690_s15 = smov [#allocation10]   ;;  %s324_s25 = sshll.u32 %s1937_s7, 4  ;;  %s325_s25 = int_to_ptr.hbm [resolvable:$true] %s324_s25 }
  0x1b   : > { %s309_s19 = sshll.u32 %s1690_s15, 4  ;;  %s1691_s27 = smov [#allocation11]   ;;  %s310_s19 = int_to_ptr.vmem [resolvable:$true] %s309_s19 }
  0x1c   : > { %1345 = dma.hbm_to_vmem [thread:$0]  (!%p1785_p6), %s308_s20, 1024, %s310_s19, [#allocation9], %s1687_s29, %s1687_s29, %s1688_s13  }
  0x1d   : > { %s326_s1 = sshll.u32 %s1691_s27, 4  ;;  %s1692_s26 = smov 128   ;;  %s327_s1 = int_to_ptr.vmem [resolvable:$true] %s326_s1 }
  0x1e   : > { %s1693_s28 = smov 8   ;;  %s1043_s14 = sadd.s32 4294967294, %s1683_s12  }
  0x1f   : > { %1348 = dma.hbm_to_vmem [thread:$0]  (!%p1785_p6), %s325_s25, 2048, %s327_s1, [#allocation12], %s1692_s26, %s1692_s26, %s1693_s28  }
  0x20   : > { %s1810_s18 = sadd.s32 1, %s1683_s12   ;;  %s35_s21 = sadd.s32 1, %s1679_s11 }
  0x21   : > { %s32_s15 = ssub.s32 %s1683_s12, %s1810_s18  ;;  %p42_p7 = scmp.ne.s32.totalorder %s1679_s11, %s1675_s10 }
  0x22   : > { %p33_p8 = scmp.eq.s32.totalorder %s32_s15, 0  ;;  %p43_p9 = scmp.eq.s32.totalorder %s1683_s12, 0 }
  0x23   : > { %p48_p10 = scmp.ne.s32.totalorder %s1675_s10, %s1671_s30  ;;  %p240_p11 = scmp.eq.s32.totalorder %s1768_s16, 1 }
  0x24   : > { %s1822_s29 = scalar_select %p33_p8, %s1679_s11, %s35_s21  }
  0x25   : > { %p1826_p12 = por %p49_p1, %p48_p10  ;;  %p1830_p13 = por %p240_p11, %p42_p7 }
  0x26   : > { %p246_p0 = scmp.eq.s32.totalorder %s1043_s14, 1  ;;  %p44_p2 = por %p43_p9, %p42_p7 }
  0x27   : > { %s343_s20 = sand.u32 1, %s1679_s11   ;;  %p1362_p6 = scmp.lt.s32.totalorder %s1683_s12, 2 }
  0x28   : > { %p1835_p4 = por %p246_p0, %p48_p10  ;;  %s1051_s22 = sshll.u32 %s343_s20, 3 }
  0x29   : > { %s1259_s24 = sshll.u32 %s1683_s12, 3  ;;  %s347_s28 = scalar_lea.vmem [#allocation2], %s1051_s22 }
  0x2a   : > { %s352_s1 = scalar_lea.hbm %s1930_s0, %s1259_s24  ;;  %s356_s21 = sshll.u32 %s347_s28, 4  ;;  %s357_s21 = int_to_ptr.vmem [resolvable:$true] %s356_s21 }
  0x2b   : > { %s354_s26 = sshll.u32 %s352_s1, 4  ;;  %p1844_p8 = pnand %p1362_p6, %p44_p2  ;;  %s355_s26 = int_to_ptr.hbm [resolvable:$true] %s354_s26 }
  0x2c   : > { %s344_s15 = scalar_lea.sflag [#allocation3], %s343_s20  ;;  %s1575_s3 = sshra.s32 %s355_s26, 4  ;;  %s1576_s3 = int_to_ptr.hbm [resolvable:$true] %s1575_s3 }
  0x2d   : > { %s1577_s4 = scalar_lea.hbm %s1576_s3, 8  ;;  %p1579_p9 = pneg %p1844_p8 }
  0x2e   : > { %p1578_p7 = scmp.ne.s32.totalorder %s1576_s3, %s1577_s4  ;;  %s1582_s22 = scalar_lea.hbm %s1930_s0, 16 }
  0x2f   : > { %p1583_p0 = scmp.lt.s32.totalorder %s1576_s3, %s1930_s0  ;;  %p1584_p2 = scmp.lt.s32.totalorder %s1582_s22, %s1577_s4 }
  0x30   : > { %p1580_p10 = pnand %p1579_p9, %p1578_p7 }
  0x31   : > { %p1585_p6 = por %p1584_p2, %p1583_p0 }
  0x32   : > { %p1581_p11 = pneg %p1580_p10 }
  0x34   : > { %p1586_p5 = pnand %p1585_p6, %p1581_p11 }
  0x36   : > { %1589 = shalt.err (!%p1586_p5)
}
  0x37   : > { %1352 = dma.hbm_to_vmem [thread:$0]  (!%p1844_p8), %s355_s26, 128, %s357_s21, %s344_s15  }
  0x38   : > { %365 = sbr.rel (%p1773_p3) target bundleno = 698 (0x2ba), region = 56  ;;  %s1861_s20 = sand.u32 (!%p1773_p3), 1, %s1675_s10  }
  0x39   : > { %s1055_s28 = sshll.u32 (!%p1773_p3), %s1861_s20, 3  ;;  %s368_s24 = scalar_lea.sflag (!%p1773_p3), [#allocation3], %s1861_s20 }
  0x3a   : > { %s1867_s3 = scalar_lea.vmem (!%p1773_p3), [#allocation2], %s1055_s28 }
  0x3d   : > { %1650 = dma.done.wait (%p1826_p12), %s368_s24, 128  }
  0x3e   : > { %1652 = vsyncadd (%p1826_p12), %s368_s24, 4294967168 }
  0x3f   : > { %1654 = dma.done.wait (%p49_p1), [#allocation6], 3072  }
  0x40   : > { %1656 = vsyncadd (%p49_p1), [#allocation6], 4294964224 }
  0x41   : > { %1658 = dma.done.wait (%p49_p1), [#allocation9], 1040  }
  0x42   : > { %1660 = vsyncadd (%p49_p1), [#allocation9], 4294966256 }
  0x43   : > { %1662 = dma.done.wait (%p49_p1), [#allocation12], 2048  }
  0x44   : > { %1664 = vsyncadd (%p49_p1), [#allocation12], 4294965248  ;;  %v1267_v0 = vld [vmem:[#allocation5 + $0x38] sm:$0xff]  ;;  %v1266_v2 = vld [vmem:[#allocation5 + $0x30] sm:$0xff]  ;;  %s1308_s15 = sshll.u32 %s1768_s16, 3  ;;  %s431_s1 = scalar_lea.vmem [#allocation13], %s1055_s28 }
  0x45   : > { %v1275_v1 = vld [vmem:[#allocation5 + $0x78] sm:$0xff]  ;;  %572 = vmatpush.bf16.msra.mxu0 %v1267_v0  ;;  %v1274_v3 = vld [vmem:[#allocation5 + $0x70] sm:$0xff]  ;;  %v1265_v4 = vld [vmem:[#allocation5 + $0x28] sm:$0xff]  ;;  %s920_s27 = scalar_lea.hbm %s1939_s9, %s1308_s15  ;;  %s922_s24 = sshll.u32 %s431_s1, 4  ;;  %s923_s24 = int_to_ptr.vmem [resolvable:$true] %s922_s24 }
  0x46   : > { %585 = vmatpush.bf16.msra.mxu1 %v1275_v1  ;;  %v1283_v5 = vld [vmem:[#allocation7 + $0x38] sm:$0xff]  ;;  %v1273_v6 = vld [vmem:[#allocation5 + $0x68] sm:$0xff]  ;;  %v1264_v7 = vld [vmem:[#allocation5 + $0x20] sm:$0xff]  ;;  %s909_s16 = scalar_lea.sflag [#allocation4], %s1861_s20  ;;  %s1625_s28 = scalar_lea.hbm %s1939_s9, 16 }
  0x47   : > { %672 = vmatpush.bf16.msra.mxu2 %v1283_v5  ;;  %v1272_v8 = vld [vmem:[#allocation5 + $0x60] sm:$0xff]  ;;  %v1263_v9 = vld [vmem:[#allocation5 + $0x18] sm:$0xff]  ;;  %v1262_v11 = vld [vmem:[#allocation5 + $0x10] sm:$0xff] }
  0x48   : > { %v1271_v10 = vld [vmem:[#allocation5 + $0x58] sm:$0xff]  ;;  %v1270_v12 = vld [vmem:[#allocation5 + $0x50] sm:$0xff]  ;;  %v1261_v13 = vld [vmem:[#allocation5 + $0x8] sm:$0xff] }
  0x49   : > { %573 = vmatpush.bf16.msra.mxu0 %v1266_v2  ;;  %v1269_v14 = vld [vmem:[#allocation5 + $0x48] sm:$0xff]  ;;  %v432_v15 = vld [vmem:[%s1867_s3] sm:$0xff]  ;;  %v1260_v18 = vld [vmem:[#allocation5] sm:$0xff]  ;;  %s924_s3 = sshll.u32 %s920_s27, 4  ;;  %s925_s3 = int_to_ptr.hbm [resolvable:$true] %s924_s3 }
  0x4a   : > { %586 = vmatpush.bf16.msra.mxu1 %v1274_v3  ;;  %v470_v16 = vunpack.c.l.b16 %v432_v15  ;;  %v471_v17 = vunpack.c.h.b16 %v432_v15  ;;  %v1268_v19 = vld [vmem:[#allocation5 + $0x40] sm:$0xff]  ;;  %v1282_v22 = vld [vmem:[#allocation7 + $0x30] sm:$0xff]  ;;  %v1281_v23 = vld [vmem:[#allocation7 + $0x28] sm:$0xff]  ;;  %s1619_s4 = sshra.s32 %s925_s3, 4  ;;  %s1620_s4 = int_to_ptr.hbm [resolvable:$true] %s1619_s4 }
  0x4b   : > { %673 = vmatpush.bf16.msra.mxu2 %v1282_v22  ;;  %v1280_v24 = vld [vmem:[#allocation7 + $0x20] sm:$0xff]  ;;  %v1279_v25 = vld [vmem:[#allocation7 + $0x18] sm:$0xff]  ;;  %v1278_v26 = vld [vmem:[#allocation7 + $0x10] sm:$0xff]  ;;  %s1621_s17 = scalar_lea.hbm %s1620_s4, 8  ;;  %p1626_p12 = scmp.lt.s32.totalorder %s1620_s4, %s1939_s9 }
  0x4c   : > { %v472_v20 = vpack.c.b16 %v470_v16, %v470_v16  ;;  %v473_v21 = vpack.c.b16 %v471_v17, %v471_v17  ;;  %v1277_v27 = vld [vmem:[#allocation7 + $0x8] sm:$0xff]  ;;  %v1276_v28 = vld [vmem:[#allocation7] sm:$0xff]  ;;  %v1410_v30 = vld [vmem:[%s1932_s2] ss:$0 sm:$0xff]  ;;  %p1622_p1 = scmp.ne.s32.totalorder %s1620_s4, %s1621_s17  ;;  %p1627_p8 = scmp.lt.s32.totalorder %s1625_s28, %s1621_s17 }
  0x4d   : > { %574 = vmatpush.bf16.msra.mxu0 %v1265_v4  ;;  %v1291_v29 = vld [vmem:[#allocation10 + $0x38] sm:$0xff]  ;;  %v1290_v31 = vld [vmem:[#allocation10 + $0x30] sm:$0xff]  ;;  %v1289_v44 = vld [vmem:[#allocation10 + $0x28] sm:$0xff] }
  0x4e   : > { %587 = vmatpush.bf16.msra.mxu1 %v1273_v6  ;;  %759 = vmatpush.bf16.msra.mxu3 %v1291_v29  ;;  %v1288_v45 = vld [vmem:[#allocation10 + $0x20] sm:$0xff]  ;;  %v1287_v46 = vld [vmem:[#allocation10 + $0x18] sm:$0xff]  ;;  %v1286_v47 = vld [vmem:[#allocation10 + $0x10] sm:$0xff]  ;;  %p1623_p3 = pnand %p1622_p1, %p1830_p13  ;;  %p1628_p7 = por %p1627_p8, %p1626_p12 }
  0x4f   : > { %674 = vmatpush.bf16.msra.mxu2 %v1281_v23  ;;  %v1285_v48 = vld [vmem:[#allocation10 + $0x8] sm:$0xff]  ;;  %v1284_v49 = vld [vmem:[#allocation10] sm:$0xff]  ;;  %v1248_v50 = vld [vmem:[#allocation11 + $0x70] sm:$0xf] }
  0x50   : > { %v1307_v51 = vld [vmem:[#allocation11 + $0x74] sm:$0xf0]  ;;  %v1306_v52 = vld [vmem:[#allocation11 + $0x74] sm:$0xf]  ;;  %v1250_v54 = vld [vmem:[#allocation11 + $0x78] sm:$0xf0]  ;;  %p1624_p5 = pneg %p1623_p3 }
  0x51   : > { %575 = vmatpush.bf16.msra.mxu0 %v1264_v7  ;;  %v1249_v53 = vor.u32 %v1307_v51, %v1248_v50  ;;  %v1240_v55 = vld [vmem:[#allocation11 + $0x60] sm:$0xf]  ;;  %v1305_v56 = vld [vmem:[#allocation11 + $0x64] sm:$0xf0]  ;;  %v1253_v57 = vor.u32 %v1306_v52, %v1250_v54  ;;  %v1304_v58 = vld [vmem:[#allocation11 + $0x64] sm:$0xf] }
  0x52   : > { %588 = vmatpush.bf16.msra.mxu1 %v1272_v8  ;;  %760 = vmatpush.bf16.msra.mxu3 %v1290_v31  ;;  %v1242_v59 = vld [vmem:[#allocation11 + $0x68] sm:$0xf0]  ;;  %v1241_v60 = vor.u32 %v1305_v56, %v1240_v55  ;;  %v1411_v61 = vld [vmem:[#allocation8] ss:$0 sm:$0xff]  ;;  %v1232_v8 = vld [vmem:[#allocation11 + $0x50] sm:$0xf]  ;;  %p1629_p9 = pnand %p1628_p7, %p1624_p5 }
  0x53   : > { %675 = vmatpush.bf16.msra.mxu2 %v1280_v24  ;;  %v1245_v62 = vor.u32 %v1304_v58, %v1242_v59  ;;  %v1301_v15 = vld [vmem:[#allocation11 + $0x44] sm:$0xf0]  ;;  %v1300_v16 = vld [vmem:[#allocation11 + $0x44] sm:$0xf]  ;;  %v1298_v22 = vld [vmem:[#allocation11 + $0x34] sm:$0xf] }
  0x54   : > { %v1218_v24 = vld [vmem:[#allocation11 + $0x38] sm:$0xf0]  ;;  %v794_v54 = vld [vmem:[%s1938_s8] sm:$0x3] }
  0x55   : > { %576 = vmatpush.bf16.msra.mxu0 %v1263_v9  ;;  %v1303_v9 = vld [vmem:[#allocation11 + $0x54] sm:$0xf0]  ;;  %v796_v55 = vperm.slane %v794_v54, 0  ;;  %v797_v56 = vperm.slane %v794_v54, 1 }
  0x56   : > { %589 = vmatpush.bf16.msra.mxu1 %v1271_v10  ;;  %761 = vmatpush.bf16.msra.mxu3 %v1289_v44  ;;  %v1302_v10 = vld [vmem:[#allocation11 + $0x54] sm:$0xf]  ;;  %v1412_v44 = vld [vmem:[%s1936_s6] ss:$0 sm:$0xff] }
  0x57   : > { %676 = vmatpush.bf16.msra.mxu2 %v1279_v25  ;;  %v1221_v25 = vor.u32 %v1298_v22, %v1218_v24 }
  0x59   : > { %577 = vmatpush.bf16.msra.mxu0 %v1262_v11  ;;  %v1233_v11 = vor.u32 %v1303_v9, %v1232_v8 }
  0x5a   : > { %590 = vmatpush.bf16.msra.mxu1 %v1270_v12  ;;  %762 = vmatpush.bf16.msra.mxu3 %v1288_v45  ;;  %v1234_v12 = vld [vmem:[#allocation11 + $0x58] sm:$0xf0] }
  0x5b   : > { %677 = vmatpush.bf16.msra.mxu2 %v1278_v26  ;;  %v1208_v26 = vld [vmem:[#allocation11 + $0x20] sm:$0xf] }
  0x5d   : > { %578 = vmatpush.bf16.msra.mxu0 %v1261_v13  ;;  %v1237_v13 = vor.u32 %v1302_v10, %v1234_v12 }
  0x5e   : > { %591 = vmatpush.bf16.msra.mxu1 %v1269_v14  ;;  %763 = vmatpush.bf16.msra.mxu3 %v1287_v46  ;;  %v1224_v14 = vld [vmem:[#allocation11 + $0x40] sm:$0xf] }
  0x5f   : > { %678 = vmatpush.bf16.msra.mxu2 %v1277_v27  ;;  %v1225_v17 = vor.u32 %v1301_v15, %v1224_v14  ;;  %v1297_v27 = vld [vmem:[#allocation11 + $0x24] sm:$0xf0] }
  0x60   : > { %v1209_v29 = vor.u32 %v1297_v27, %v1208_v26 }
  0x61   : > { %579 = vmatpush.bf16.msra.mxu0 %v1260_v18  ;;  %v1226_v18 = vld [vmem:[#allocation11 + $0x48] sm:$0xf0] }
  0x62   : > { %592 = vmatpush.bf16.msra.mxu1 %v1268_v19  ;;  %764 = vmatpush.bf16.msra.mxu3 %v1286_v47  ;;  %v1229_v19 = vor.u32 %v1300_v16, %v1226_v18 }
  0x63   : > { %679 = vmatpush.bf16.msra.mxu2 %v1276_v28  ;;  %v1296_v28 = vld [vmem:[#allocation11 + $0x24] sm:$0xf] }
  0x64   : > { %580 = vmatmul.bf16.vlgmr.msra.gmra.mxu0 %v472_v20  ;;  %v1216_v20 = vld [vmem:[#allocation11 + $0x30] sm:$0xf] }
  0x65   : > { %593 = vmatmul.bf16.vlgmr.msra.gmra.mxu1 %v473_v21  ;;  %880 = vmatpush.bf16.msrb.mxu0 %v1249_v53  ;;  %v1299_v21 = vld [vmem:[#allocation11 + $0x34] sm:$0xf0] }
  0x66   : > { %765 = vmatpush.bf16.msra.mxu3 %v1285_v48  ;;  %893 = vmatpush.bf16.msrb.mxu1 %v1253_v57  ;;  %v1217_v23 = vor.u32 %v1299_v21, %v1216_v20 }
  0x69   : > { %881 = vmatpush.bf16.msrb.mxu0 %v1241_v60 }
  0x6a   : > { %766 = vmatpush.bf16.msra.mxu3 %v1284_v49  ;;  %894 = vmatpush.bf16.msrb.mxu1 %v1245_v62 }
  0x6d   : > { %882 = vmatpush.bf16.msrb.mxu0 %v1233_v11 }
  0x6e   : > { %895 = vmatpush.bf16.msrb.mxu1 %v1237_v13 }
  0x71   : > { %883 = vmatpush.bf16.msrb.mxu0 %v1225_v17 }
  0x72   : > { %896 = vmatpush.bf16.msrb.mxu1 %v1229_v19 }
  0x75   : > { %884 = vmatpush.bf16.msrb.mxu0 %v1217_v23 }
  0x76   : > { %897 = vmatpush.bf16.msrb.mxu1 %v1221_v25 }
  0x79   : > { %885 = vmatpush.bf16.msrb.mxu0 %v1209_v29 }
  0xe1   : > { %v581_v32 = vpop.f32.mrf.mxu0 }
  0xe2   : > { %v594_v33 = vpop.f32.mrf.mxu1  ;;  %v582_v34 = vadd.f32 %v1410_v30, %v581_v32  ;;  %v1210_v30 = vld [vmem:[#allocation11 + $0x28] sm:$0xf0]  ;;  %v1200_v32 = vld [vmem:[#allocation11 + $0x10] sm:$0xf] }
  0xe3   : > { %v1213_v31 = vor.u32 %v1296_v28, %v1210_v30 }
  0xe4   : > { %v595_v35 = vadd.f32 %v594_v33, %v582_v34  ;;  %v1295_v33 = vld [vmem:[#allocation11 + $0x14] sm:$0xf0]  ;;  %v1294_v34 = vld [vmem:[#allocation11 + $0x14] sm:$0xf] }
  0xe5   : > { %898 = vmatpush.bf16.msrb.mxu1 %v1213_v31 }
  0xe6   : > { %v598_v36 = vsub.f32 0.0, %v595_v35  ;;  %v1201_v35 = vor.u32 %v1295_v33, %v1200_v32 }
  0xe8   : > { %v599_v37 = vmul.f32 1.442695, %v598_v36  ;;  %v1202_v36 = vld [vmem:[#allocation11 + $0x18] sm:$0xf0]  ;;  %886 = vmatpush.bf16.msrb.mxu0 %v1201_v35 }
  0xe9   : > { %v583_v38 = vpop.f32.mrf.mxu0 }
  0xea   : > { %v596_v39 = vpop.f32.mrf.mxu1  ;;  %1413 = vpow2.f32 %v599_v37  ;;  %v1192_v37 = vld [vmem:[#allocation11] sm:$0xf]  ;;  %v1293_v38 = vld [vmem:[#allocation11 + $0x4] sm:$0xf0] }
  0xeb   : > { %v1205_v39 = vor.u32 %v1294_v34, %v1202_v36 }
  0xed   : > { %899 = vmatpush.bf16.msrb.mxu1 %v1205_v39 }
  0xf0   : > { %v1414_v40 = vpop.eup %1413 }
  0xf1   : > { %v601_v41 = vadd.f32 1.0, %v1414_v40  ;;  %v1292_v40 = vld [vmem:[#allocation11 + $0x4] sm:$0xf] }
  0xf3   : > { %1415 = vrcp.f32 %v601_v41  ;;  %v1194_v41 = vld [vmem:[#allocation11 + $0x8] sm:$0xf0] }
  0xf9   : > { %v1416_v42 = vpop.eup %1415 }
  0xfa   : > { %v603_v43 = vpack.c.bf16 %v1416_v42, %v1416_v42  ;;  %v1193_v42 = vor.u32 %v1293_v38, %v1192_v37 }
  0xfc   : > { %680 = vmatmul.bf16.vlgmr.msra.gmra.mxu2 %v603_v43  ;;  %v1197_v43 = vor.u32 %v1292_v40, %v1194_v41  ;;  %887 = vmatpush.bf16.msrb.mxu0 %v1193_v42 }
  0xfe   : > { %900 = vmatpush.bf16.msrb.mxu1 %v1197_v43 }
 0x17f   : > { %v681_v63 = vpop.f32.mrf.mxu2 }
 0x180   : > { %v682_v0 = vadd.f32 %v1411_v61, %v681_v63 }
 0x182   : > { %v685_v1 = vsub.f32 0.0, %v682_v0 }
 0x184   : > { %v686_v2 = vmul.f32 1.442695, %v685_v1 }
 0x186   : > { %1417 = vpow2.f32 %v686_v2 }
 0x187   : > { %v683_v3 = vpop.f32.mrf.mxu2 }
 0x18c   : > { %v1418_v4 = vpop.eup %1417 }
 0x18d   : > { %v688_v5 = vadd.f32 1.0, %v1418_v4 }
 0x18f   : > { %1419 = vrcp.f32 %v688_v5 }
 0x195   : > { %v1420_v6 = vpop.eup %1419 }
 0x196   : > { %v690_v7 = vpack.c.bf16 %v1420_v6, %v1420_v6 }
 0x198   : > { %767 = vmatmul.bf16.vlgmr.msra.gmra.mxu3 %v690_v7 }
 0x21b   : > { %v768_v45 = vpop.f32.mrf.mxu3 }
 0x21c   : > { %v769_v46 = vadd.f32 %v1412_v44, %v768_v45 }
 0x21e   : > { %v772_v47 = vsub.f32 0.0, %v769_v46 }
 0x220   : > { %v773_v48 = vmul.f32 1.442695, %v772_v47 }
 0x222   : > { %1421 = vpow2.f32 %v773_v48 }
 0x223   : > { %v770_v49 = vpop.f32.mrf.mxu3 }
 0x228   : > { %v1422_v50 = vpop.eup %1421 }
 0x229   : > { %v775_v51 = vadd.f32 1.0, %v1422_v50 }
 0x22b   : > { %1423 = vrcp.f32 %v775_v51 }
 0x231   : > { %v1424_v52 = vpop.eup %1423 }
 0x232   : > { %v777_v53 = vpack.c.bf16 %v1424_v52, %v1424_v52 }
 0x234   : > { %888 = vmatmul.bf16.vlgmr.msrb.gmra.mxu0 %v777_v53  ;;  %901 = vmatmul.bf16.vlgmr.msrb.gmra.mxu1 %v777_v53 }
 0x2b1   : > { %v889_v57 = vpop.f32.mrf.mxu0  ;;  %v902_v58 = vpop.f32.mrf.mxu1 }
 0x2b2   : > { %v890_v59 = vadd.f32 %v889_v57, %v796_v55  ;;  %v903_v60 = vadd.f32 %v902_v58, %v797_v56 }
 0x2b4   : > { %v906_v61 = vpack.c.bf16 %v903_v60, %v890_v59 }
 0x2b6   : > { %907 = vst [vmem:[%s431_s1] sm:$0xff] %v906_v61 }
 0x2b7   : > { %1632 = shalt.err (!%p1629_p9)
}
 0x2b8   : > { %1331 = dma.vmem_to_hbm [thread:$0]  (%p1830_p13), %s923_s24, 128, %s925_s3, %s909_s16  }
 0x2b9   : > { %v891_v62 = vpop.f32.mrf.mxu0  ;;  %v904_v63 = vpop.f32.mrf.mxu1 }
 0x2ba PF: > { %s936_s20 = sand.u32 1, %s1671_s30   ;;  %p1952_p10 = scmp.ge.s32.totalorder %s1683_s12, 2 }
 0x2bb   : > { %s937_s15 = scalar_lea.sflag [#allocation4], %s936_s20 }
 0x2bc   : > { %p1354_p11 = pnand %p1952_p10, %p1835_p4 }
 0x2be   : > { %p1355_p0 = pneg %p1354_p11 }
 0x2c0   : > { %1666 = dma.done.wait (%p1355_p0), %s937_s15, 128  }
 0x2c1   : > { %1668 = vsyncadd (%p1355_p0), %s937_s15, 4294967168  ;;  %p25_p13 = scmp.ge.s32.totalorder %s1810_s18, 4   ;;  %s1953_s30 = smov %s1675_s10 }
 0x2c2   : > { %s1954_s10 = smov %s1679_s11  ;;  %s1955_s11 = smov %s1822_s29 }
 0x2c3   : > { %s1956_s12 = smov %s1810_s18  ;;  %27 = sbr.rel (!%p25_p13) target bundleno = 12 (0xc), region = 121 }
 0x2c8   :  { %943 = vsyncpa [#allocation3], 1 }
 0x2c9   :  { %945 = vsyncpa [#allocation3 + $0x1], 1 }
 0x2ca   :  { %946 = vsyncpa [#allocation6], 1 }
 0x2cb   :  { %947 = vsyncpa [#allocation9], 1 }
 0x2cc   :  { %948 = vsyncpa [#allocation12], 1 }
 0x2cd   :  { %949 = vsyncpa [#allocation4], 1 }
 0x2ce   :  { %951 = vsyncpa [#allocation4 + $0x1], 1 }

// kernel: tpu_custom_call.1
= control target key start
LH: loop header
LB: loop body
LE: loop exit
PB: predicated region body
PF: predicated region fallthrough
CT: control target
= control target key end

     0   :  { %s1930_s0 = inlined_call_operand.hbm [shape: bf16[16,256], index: 0, kind: input, shape index: {}]   ;;  %s1931_s1 = inlined_call_operand.hbm [shape: bf16[256,128], index: 1, kind: input, shape index: {}]   ;;  %s1932_s2 = inlined_call_operand.vmem [shape: f32[1,128], index: 2, kind: input, shape index: {}]   ;;  %s1933_s3 = inlined_call_operand.hbm [shape: bf16[128,128], index: 3, kind: input, shape index: {}]   ;;  %s1934_s4 = inlined_call_operand.hbm [shape: f32[1,128], index: 4, kind: input, shape index: {}]   ;;  %s1935_s5 = inlined_call_operand.hbm [shape: bf16[128,128], index: 5, kind: input, shape index: {}]   ;;  %s1936_s6 = inlined_call_operand.vmem [shape: f32[1,128], index: 6, kind: input, shape index: {}]   ;;  %s1937_s7 = inlined_call_operand.hbm [shape: bf16[128,256], index: 7, kind: input, shape index: {}]   ;;  %s1938_s8 = inlined_call_operand.vmem [shape: f32[1,256], index: 8, kind: input, shape index: {}]   ;;  %s1939_s9 = inlined_call_operand.hbm [shape: bf16[16,256], index: 9, kind: output, shape index: {}]  }
   0x1   :  { %1940 = sst [smem:[#allocation19_spill]] %s1931_s1 }
   0x2   :  { %1941 = sst [smem:[#allocation20_spill]] %s1933_s3 }
   0x3   :  { %1942 = sst [smem:[#allocation21_spill]] %s1934_s4 }
   0x4   :  { %14 = vsyncpa [#allocation3], 0 }
   0x5   :  { %16 = vsyncpa [#allocation3 + $0x1], 0 }
   0x6   :  { %17 = vsyncpa [#allocation6], 0 }
   0x7   :  { %18 = vsyncpa [#allocation9], 0 }
   0x8   :  { %19 = vsyncpa [#allocation12], 0 }
   0x9   :  { %20 = vsyncpa [#allocation4], 0 }
   0xa   :  { %22 = vsyncpa [#allocation4 + $0x1], 0  ;;  %s1744_s30 = smov 0   ;;  %s1746_s10 = smov 0  }
   0xb   :  { %s1748_s11 = smov 0   ;;  %s1750_s12 = smov 0  }
   0xc LB: > { %s1943_s1 = sld [smem:[#allocation19_spill]]  ;;  %s1768_s16 = sadd.s32 4294967295, %s1683_s12   ;;  %s1683_s12 = sphi %s1750_s12, %s1956_s12   ;;  %s1679_s11 = sphi %s1748_s11, %s1955_s11   ;;  %s1675_s10 = sphi %s1746_s10, %s1954_s10   ;;  %s1671_s30 = sphi %s1744_s30, %s1953_s30  }
   0xd   : > { %p1044_p0 = scmp.ge.s32.totalorder %s1683_s12, 1  ;;  %p49_p1 = scmp.eq.s32.totalorder %s1768_s16, 0 }
   0xe   : > { %p253_p2 = scmp.lt.s32.totalorder %s1683_s12, 3  ;;  %s1685_s18 = smov [#allocation5]  }
   0xf   : > { %s266_s19 = sshll.u32 %s1685_s18, 4  ;;  %s1945_s4 = sld [smem:[#allocation21_spill]]  ;;  %s267_s19 = int_to_ptr.vmem [resolvable:$true] %s266_s19 }
  0x10   : > { %p1773_p3 = pnand %p1044_p0, %p253_p2  ;;  %s1947_s3 = sld [smem:[#allocation20_spill]] }
  0x11   : > { %s1686_s27 = smov [#allocation8]   ;;  %s1687_s29 = smov 64  }
  0x12   : > { %s264_s15 = sshll.u32 %s1943_s1, 4  ;;  %p1333_p4 = pneg %p1773_p3  ;;  %s265_s15 = int_to_ptr.hbm [resolvable:$true] %s264_s15 }
  0x13   : > { %s298_s28 = sshll.u32 %s1686_s27, 4  ;;  %s1688_s13 = smov 4   ;;  %s299_s28 = int_to_ptr.vmem [resolvable:$true] %s298_s28 }
  0x14   : > { %p1785_p6 = pnand %p1333_p4, %p49_p1  ;;  %s307_s20 = sshll.u32 %s1935_s5, 4  ;;  %s308_s20 = int_to_ptr.hbm [resolvable:$true] %s307_s20 }
  0x15   : > { %s296_s22 = sshll.u32 %s1945_s4, 4  ;;  %s1689_s21 = smov [#allocation7]   ;;  %s297_s22 = int_to_ptr.hbm [resolvable:$true] %s296_s22 }
  0x16   : > { %s281_s26 = sshll.u32 %s1947_s3, 4  ;;  %s283_s1 = sshll.u32 %s1689_s21, 4  ;;  %s282_s26 = int_to_ptr.hbm [resolvable:$true] %s281_s26  ;;  %s284_s1 = int_to_ptr.vmem [resolvable:$true] %s283_s1 }
  0x17   : > { %1336 = dma.hbm_to_vmem [thread:$0]  (!%p1785_p6), %s265_s15, 2048, %s267_s19, [#allocation6], %s1687_s29, %s1687_s29, %s1688_s13  }
  0x18   : > { %1342 = dma.hbm_to_vmem [thread:$0]  (!%p1785_p6), %s297_s22, 16, %s299_s28, [#allocation9]  }
  0x19   : > { %1339 = dma.hbm_to_vmem [thread:$0]  (!%p1785_p6), %s282_s26, 1024, %s284_s1, [#allocation6], %s1687_s29, %s1687_s29, %s1688_s13  }
  0x1a   : > { %s1690_s15 = smov [#allocation10]   ;;  %s324_s25 = sshll.u32 %s1937_s7, 4  ;;  %s325_s25 = int_to_ptr.hbm [resolvable:$true] %s324_s25 }
  0x1b   : > { %s309_s19 = sshll.u32 %s1690_s15, 4  ;;  %s1691_s27 = smov [#allocation11]   ;;  %s310_s19 = int_to_ptr.vmem [resolvable:$true] %s309_s19 }
  0x1c   : > { %1345 = dma.hbm_to_vmem [thread:$0]  (!%p1785_p6), %s308_s20, 1024, %s310_s19, [#allocation9], %s1687_s29, %s1687_s29, %s1688_s13  }
  0x1d   : > { %s326_s1 = sshll.u32 %s1691_s27, 4  ;;  %s1692_s26 = smov 128   ;;  %s327_s1 = int_to_ptr.vmem [resolvable:$true] %s326_s1 }
  0x1e   : > { %s1693_s28 = smov 8   ;;  %s1043_s14 = sadd.s32 4294967294, %s1683_s12  }
  0x1f   : > { %1348 = dma.hbm_to_vmem [thread:$0]  (!%p1785_p6), %s325_s25, 2048, %s327_s1, [#allocation12], %s1692_s26, %s1692_s26, %s1693_s28  }
  0x20   : > { %s1810_s18 = sadd.s32 1, %s1683_s12   ;;  %s35_s21 = sadd.s32 1, %s1679_s11 }
  0x21   : > { %s32_s15 = ssub.s32 %s1683_s12, %s1810_s18  ;;  %p42_p7 = scmp.ne.s32.totalorder %s1679_s11, %s1675_s10 }
  0x22   : > { %p33_p8 = scmp.eq.s32.totalorder %s32_s15, 0  ;;  %p43_p9 = scmp.eq.s32.totalorder %s1683_s12, 0 }
  0x23   : > { %p48_p10 = scmp.ne.s32.totalorder %s1675_s10, %s1671_s30  ;;  %p240_p11 = scmp.eq.s32.totalorder %s1768_s16, 1 }
  0x24   : > { %s1822_s29 = scalar_select %p33_p8, %s1679_s11, %s35_s21  }
  0x25   : > { %p1826_p12 = por %p49_p1, %p48_p10  ;;  %p1830_p13 = por %p240_p11, %p42_p7 }
  0x26   : > { %p246_p0 = scmp.eq.s32.totalorder %s1043_s14, 1  ;;  %p44_p2 = por %p43_p9, %p42_p7 }
  0x27   : > { %s343_s20 = sand.u32 1, %s1679_s11   ;;  %p1362_p6 = scmp.lt.s32.totalorder %s1683_s12, 2 }
  0x28   : > { %p1835_p4 = por %p246_p0, %p48_p10  ;;  %s1051_s22 = sshll.u32 %s343_s20, 3 }
  0x29   : > { %s1259_s24 = sshll.u32 %s1683_s12, 3  ;;  %s347_s28 = scalar_lea.vmem [#allocation2], %s1051_s22 }
  0x2a   : > { %s352_s1 = scalar_lea.hbm %s1930_s0, %s1259_s24  ;;  %s356_s21 = sshll.u32 %s347_s28, 4  ;;  %s357_s21 = int_to_ptr.vmem [resolvable:$true] %s356_s21 }
  0x2b   : > { %s354_s26 = sshll.u32 %s352_s1, 4  ;;  %p1844_p8 = pnand %p1362_p6, %p44_p2  ;;  %s355_s26 = int_to_ptr.hbm [resolvable:$true] %s354_s26 }
  0x2c   : > { %s344_s15 = scalar_lea.sflag [#allocation3], %s343_s20  ;;  %s1575_s3 = sshra.s32 %s355_s26, 4  ;;  %s1576_s3 = int_to_ptr.hbm [resolvable:$true] %s1575_s3 }
  0x2d   : > { %s1577_s4 = scalar_lea.hbm %s1576_s3, 8  ;;  %p1579_p9 = pneg %p1844_p8 }
  0x2e   : > { %p1578_p7 = scmp.ne.s32.totalorder %s1576_s3, %s1577_s4  ;;  %s1582_s22 = scalar_lea.hbm %s1930_s0, 16 }
  0x2f   : > { %p1583_p0 = scmp.lt.s32.totalorder %s1576_s3, %s1930_s0  ;;  %p1584_p2 = scmp.lt.s32.totalorder %s1582_s22, %s1577_s4 }
  0x30   : > { %p1580_p10 = pnand %p1579_p9, %p1578_p7 }
  0x31   : > { %p1585_p6 = por %p1584_p2, %p1583_p0 }
  0x32   : > { %p1581_p11 = pneg %p1580_p10 }
  0x34   : > { %p1586_p5 = pnand %p1585_p6, %p1581_p11 }
  0x36   : > { %1589 = shalt.err (!%p1586_p5)
}
  0x37   : > { %1352 = dma.hbm_to_vmem [thread:$0]  (!%p1844_p8), %s355_s26, 128, %s357_s21, %s344_s15  }
  0x38   : > { %365 = sbr.rel (%p1773_p3) target bundleno = 698 (0x2ba), region = 56  ;;  %s1861_s20 = sand.u32 (!%p1773_p3), 1, %s1675_s10  }
  0x39   : > { %s1055_s28 = sshll.u32 (!%p1773_p3), %s1861_s20, 3  ;;  %s368_s24 = scalar_lea.sflag (!%p1773_p3), [#allocation3], %s1861_s20 }
  0x3a   : > { %s1867_s3 = scalar_lea.vmem (!%p1773_p3), [#allocation2], %s1055_s28 }
  0x3d   : > { %1650 = dma.done.wait (%p1826_p12), %s368_s24, 128  }
  0x3e   : > { %1652 = vsyncadd (%p1826_p12), %s368_s24, 4294967168 }
  0x3f   : > { %1654 = dma.done.wait (%p49_p1), [#allocation6], 3072  }
  0x40   : > { %1656 = vsyncadd (%p49_p1), [#allocation6], 4294964224 }
  0x41   : > { %1658 = dma.done.wait (%p49_p1), [#allocation9], 1040  }
  0x42   : > { %1660 = vsyncadd (%p49_p1), [#allocation9], 4294966256 }
  0x43   : > { %1662 = dma.done.wait (%p49_p1), [#allocation12], 2048  }
  0x44   : > { %1664 = vsyncadd (%p49_p1), [#allocation12], 4294965248  ;;  %v1267_v0 = vld [vmem:[#allocation5 + $0x38] sm:$0xff]  ;;  %v1266_v2 = vld [vmem:[#allocation5 + $0x30] sm:$0xff]  ;;  %s1308_s15 = sshll.u32 %s1768_s16, 3  ;;  %s431_s1 = scalar_lea.vmem [#allocation13], %s1055_s28 }
  0x45   : > { %v1275_v1 = vld [vmem:[#allocation5 + $0x78] sm:$0xff]  ;;  %572 = vmatpush.bf16.msra.mxu0 %v1267_v0  ;;  %v1274_v3 = vld [vmem:[#allocation5 + $0x70] sm:$0xff]  ;;  %v1265_v4 = vld [vmem:[#allocation5 + $0x28] sm:$0xff]  ;;  %s920_s27 = scalar_lea.hbm %s1939_s9, %s1308_s15  ;;  %s922_s24 = sshll.u32 %s431_s1, 4  ;;  %s923_s24 = int_to_ptr.vmem [resolvable:$true] %s922_s24 }
  0x46   : > { %585 = vmatpush.bf16.msra.mxu1 %v1275_v1  ;;  %v1283_v5 = vld [vmem:[#allocation7 + $0x38] sm:$0xff]  ;;  %v1273_v6 = vld [vmem:[#allocation5 + $0x68] sm:$0xff]  ;;  %v1264_v7 = vld [vmem:[#allocation5 + $0x20] sm:$0xff]  ;;  %s909_s16 = scalar_lea.sflag [#allocation4], %s1861_s20  ;;  %s1625_s28 = scalar_lea.hbm %s1939_s9, 16 }
  0x47   : > { %672 = vmatpush.bf16.msra.mxu2 %v1283_v5  ;;  %v1272_v8 = vld [vmem:[#allocation5 + $0x60] sm:$0xff]  ;;  %v1263_v9 = vld [vmem:[#allocation5 + $0x18] sm:$0xff]  ;;  %v1262_v11 = vld [vmem:[#allocation5 + $0x10] sm:$0xff] }
  0x48   : > { %v1271_v10 = vld [vmem:[#allocation5 + $0x58] sm:$0xff]  ;;  %v1270_v12 = vld [vmem:[#allocation5 + $0x50] sm:$0xff]  ;;  %v1261_v13 = vld [vmem:[#allocation5 + $0x8] sm:$0xff] }
  0x49   : > { %573 = vmatpush.bf16.msra.mxu0 %v1266_v2  ;;  %v1269_v14 = vld [vmem:[#allocation5 + $0x48] sm:$0xff]  ;;  %v432_v15 = vld [vmem:[%s1867_s3] sm:$0xff]  ;;  %v1260_v18 = vld [vmem:[#allocation5] sm:$0xff]  ;;  %s924_s3 = sshll.u32 %s920_s27, 4  ;;  %s925_s3 = int_to_ptr.hbm [resolvable:$true] %s924_s3 }
  0x4a   : > { %586 = vmatpush.bf16.msra.mxu1 %v1274_v3  ;;  %v470_v16 = vunpack.c.l.b16 %v432_v15  ;;  %v471_v17 = vunpack.c.h.b16 %v432_v15  ;;  %v1268_v19 = vld [vmem:[#allocation5 + $0x40] sm:$0xff]  ;;  %v1282_v22 = vld [vmem:[#allocation7 + $0x30] sm:$0xff]  ;;  %v1281_v23 = vld [vmem:[#allocation7 + $0x28] sm:$0xff]  ;;  %s1619_s4 = sshra.s32 %s925_s3, 4  ;;  %s1620_s4 = int_to_ptr.hbm [resolvable:$true] %s1619_s4 }
  0x4b   : > { %673 = vmatpush.bf16.msra.mxu2 %v1282_v22  ;;  %v1280_v24 = vld [vmem:[#allocation7 + $0x20] sm:$0xff]  ;;  %v1279_v25 = vld [vmem:[#allocation7 + $0x18] sm:$0xff]  ;;  %v1278_v26 = vld [vmem:[#allocation7 + $0x10] sm:$0xff]  ;;  %s1621_s17 = scalar_lea.hbm %s1620_s4, 8  ;;  %p1626_p12 = scmp.lt.s32.totalorder %s1620_s4, %s1939_s9 }
  0x4c   : > { %v472_v20 = vpack.c.b16 %v470_v16, %v470_v16  ;;  %v473_v21 = vpack.c.b16 %v471_v17, %v471_v17  ;;  %v1277_v27 = vld [vmem:[#allocation7 + $0x8] sm:$0xff]  ;;  %v1276_v28 = vld [vmem:[#allocation7] sm:$0xff]  ;;  %v1410_v30 = vld [vmem:[%s1932_s2] ss:$0 sm:$0xff]  ;;  %p1622_p1 = scmp.ne.s32.totalorder %s1620_s4, %s1621_s17  ;;  %p1627_p8 = scmp.lt.s32.totalorder %s1625_s28, %s1621_s17 }
  0x4d   : > { %574 = vmatpush.bf16.msra.mxu0 %v1265_v4  ;;  %v1291_v29 = vld [vmem:[#allocation10 + $0x38] sm:$0xff]  ;;  %v1290_v31 = vld [vmem:[#allocation10 + $0x30] sm:$0xff]  ;;  %v1289_v44 = vld [vmem:[#allocation10 + $0x28] sm:$0xff] }
  0x4e   : > { %587 = vmatpush.bf16.msra.mxu1 %v1273_v6  ;;  %759 = vmatpush.bf16.msra.mxu3 %v1291_v29  ;;  %v1288_v45 = vld [vmem:[#allocation10 + $0x20] sm:$0xff]  ;;  %v1287_v46 = vld [vmem:[#allocation10 + $0x18] sm:$0xff]  ;;  %v1286_v47 = vld [vmem:[#allocation10 + $0x10] sm:$0xff]  ;;  %p1623_p3 = pnand %p1622_p1, %p1830_p13  ;;  %p1628_p7 = por %p1627_p8, %p1626_p12 }
  0x4f   : > { %674 = vmatpush.bf16.msra.mxu2 %v1281_v23  ;;  %v1285_v48 = vld [vmem:[#allocation10 + $0x8] sm:$0xff]  ;;  %v1284_v49 = vld [vmem:[#allocation10] sm:$0xff]  ;;  %v1248_v50 = vld [vmem:[#allocation11 + $0x70] sm:$0xf] }
  0x50   : > { %v1307_v51 = vld [vmem:[#allocation11 + $0x74] sm:$0xf0]  ;;  %v1306_v52 = vld [vmem:[#allocation11 + $0x74] sm:$0xf]  ;;  %v1250_v54 = vld [vmem:[#allocation11 + $0x78] sm:$0xf0]  ;;  %p1624_p5 = pneg %p1623_p3 }
  0x51   : > { %575 = vmatpush.bf16.msra.mxu0 %v1264_v7  ;;  %v1249_v53 = vor.u32 %v1307_v51, %v1248_v50  ;;  %v1240_v55 = vld [vmem:[#allocation11 + $0x60] sm:$0xf]  ;;  %v1305_v56 = vld [vmem:[#allocation11 + $0x64] sm:$0xf0]  ;;  %v1253_v57 = vor.u32 %v1306_v52, %v1250_v54  ;;  %v1304_v58 = vld [vmem:[#allocation11 + $0x64] sm:$0xf] }
  0x52   : > { %588 = vmatpush.bf16.msra.mxu1 %v1272_v8  ;;  %760 = vmatpush.bf16.msra.mxu3 %v1290_v31  ;;  %v1242_v59 = vld [vmem:[#allocation11 + $0x68] sm:$0xf0]  ;;  %v1241_v60 = vor.u32 %v1305_v56, %v1240_v55  ;;  %v1411_v61 = vld [vmem:[#allocation8] ss:$0 sm:$0xff]  ;;  %v1232_v8 = vld [vmem:[#allocation11 + $0x50] sm:$0xf]  ;;  %p1629_p9 = pnand %p1628_p7, %p1624_p5 }
  0x53   : > { %675 = vmatpush.bf16.msra.mxu2 %v1280_v24  ;;  %v1245_v62 = vor.u32 %v1304_v58, %v1242_v59  ;;  %v1301_v15 = vld [vmem:[#allocation11 + $0x44] sm:$0xf0]  ;;  %v1300_v16 = vld [vmem:[#allocation11 + $0x44] sm:$0xf]  ;;  %v1298_v22 = vld [vmem:[#allocation11 + $0x34] sm:$0xf] }
  0x54   : > { %v1218_v24 = vld [vmem:[#allocation11 + $0x38] sm:$0xf0]  ;;  %v794_v54 = vld [vmem:[%s1938_s8] sm:$0x3] }
  0x55   : > { %576 = vmatpush.bf16.msra.mxu0 %v1263_v9  ;;  %v1303_v9 = vld [vmem:[#allocation11 + $0x54] sm:$0xf0]  ;;  %v796_v55 = vperm.slane %v794_v54, 0  ;;  %v797_v56 = vperm.slane %v794_v54, 1 }
  0x56   : > { %589 = vmatpush.bf16.msra.mxu1 %v1271_v10  ;;  %761 = vmatpush.bf16.msra.mxu3 %v1289_v44  ;;  %v1302_v10 = vld [vmem:[#allocation11 + $0x54] sm:$0xf]  ;;  %v1412_v44 = vld [vmem:[%s1936_s6] ss:$0 sm:$0xff] }
  0x57   : > { %676 = vmatpush.bf16.msra.mxu2 %v1279_v25  ;;  %v1221_v25 = vor.u32 %v1298_v22, %v1218_v24 }
  0x59   : > { %577 = vmatpush.bf16.msra.mxu0 %v1262_v11  ;;  %v1233_v11 = vor.u32 %v1303_v9, %v1232_v8 }
  0x5a   : > { %590 = vmatpush.bf16.msra.mxu1 %v1270_v12  ;;  %762 = vmatpush.bf16.msra.mxu3 %v1288_v45  ;;  %v1234_v12 = vld [vmem:[#allocation11 + $0x58] sm:$0xf0] }
  0x5b   : > { %677 = vmatpush.bf16.msra.mxu2 %v1278_v26  ;;  %v1208_v26 = vld [vmem:[#allocation11 + $0x20] sm:$0xf] }
  0x5d   : > { %578 = vmatpush.bf16.msra.mxu0 %v1261_v13  ;;  %v1237_v13 = vor.u32 %v1302_v10, %v1234_v12 }
  0x5e   : > { %591 = vmatpush.bf16.msra.mxu1 %v1269_v14  ;;  %763 = vmatpush.bf16.msra.mxu3 %v1287_v46  ;;  %v1224_v14 = vld [vmem:[#allocation11 + $0x40] sm:$0xf] }
  0x5f   : > { %678 = vmatpush.bf16.msra.mxu2 %v1277_v27  ;;  %v1225_v17 = vor.u32 %v1301_v15, %v1224_v14  ;;  %v1297_v27 = vld [vmem:[#allocation11 + $0x24] sm:$0xf0] }
  0x60   : > { %v1209_v29 = vor.u32 %v1297_v27, %v1208_v26 }
  0x61   : > { %579 = vmatpush.bf16.msra.mxu0 %v1260_v18  ;;  %v1226_v18 = vld [vmem:[#allocation11 + $0x48] sm:$0xf0] }
  0x62   : > { %592 = vmatpush.bf16.msra.mxu1 %v1268_v19  ;;  %764 = vmatpush.bf16.msra.mxu3 %v1286_v47  ;;  %v1229_v19 = vor.u32 %v1300_v16, %v1226_v18 }
  0x63   : > { %679 = vmatpush.bf16.msra.mxu2 %v1276_v28  ;;  %v1296_v28 = vld [vmem:[#allocation11 + $0x24] sm:$0xf] }
  0x64   : > { %580 = vmatmul.bf16.vlgmr.msra.gmra.mxu0 %v472_v20  ;;  %v1216_v20 = vld [vmem:[#allocation11 + $0x30] sm:$0xf] }
  0x65   : > { %593 = vmatmul.bf16.vlgmr.msra.gmra.mxu1 %v473_v21  ;;  %880 = vmatpush.bf16.msrb.mxu0 %v1249_v53  ;;  %v1299_v21 = vld [vmem:[#allocation11 + $0x34] sm:$0xf0] }
  0x66   : > { %765 = vmatpush.bf16.msra.mxu3 %v1285_v48  ;;  %893 = vmatpush.bf16.msrb.mxu1 %v1253_v57  ;;  %v1217_v23 = vor.u32 %v1299_v21, %v1216_v20 }
  0x69   : > { %881 = vmatpush.bf16.msrb.mxu0 %v1241_v60 }
  0x6a   : > { %766 = vmatpush.bf16.msra.mxu3 %v1284_v49  ;;  %894 = vmatpush.bf16.msrb.mxu1 %v1245_v62 }
  0x6d   : > { %882 = vmatpush.bf16.msrb.mxu0 %v1233_v11 }
  0x6e   : > { %895 = vmatpush.bf16.msrb.mxu1 %v1237_v13 }
  0x71   : > { %883 = vmatpush.bf16.msrb.mxu0 %v1225_v17 }
  0x72   : > { %896 = vmatpush.bf16.msrb.mxu1 %v1229_v19 }
  0x75   : > { %884 = vmatpush.bf16.msrb.mxu0 %v1217_v23 }
  0x76   : > { %897 = vmatpush.bf16.msrb.mxu1 %v1221_v25 }
  0x79   : > { %885 = vmatpush.bf16.msrb.mxu0 %v1209_v29 }
  0xe1   : > { %v581_v32 = vpop.f32.mrf.mxu0 }
  0xe2   : > { %v594_v33 = vpop.f32.mrf.mxu1  ;;  %v582_v34 = vadd.f32 %v1410_v30, %v581_v32  ;;  %v1210_v30 = vld [vmem:[#allocation11 + $0x28] sm:$0xf0]  ;;  %v1200_v32 = vld [vmem:[#allocation11 + $0x10] sm:$0xf] }
  0xe3   : > { %v1213_v31 = vor.u32 %v1296_v28, %v1210_v30 }
  0xe4   : > { %v595_v35 = vadd.f32 %v594_v33, %v582_v34  ;;  %v1295_v33 = vld [vmem:[#allocation11 + $0x14] sm:$0xf0]  ;;  %v1294_v34 = vld [vmem:[#allocation11 + $0x14] sm:$0xf] }
  0xe5   : > { %898 = vmatpush.bf16.msrb.mxu1 %v1213_v31 }
  0xe6   : > { %v598_v36 = vsub.f32 0.0, %v595_v35  ;;  %v1201_v35 = vor.u32 %v1295_v33, %v1200_v32 }
  0xe8   : > { %v599_v37 = vmul.f32 1.442695, %v598_v36  ;;  %v1202_v36 = vld [vmem:[#allocation11 + $0x18] sm:$0xf0]  ;;  %886 = vmatpush.bf16.msrb.mxu0 %v1201_v35 }
  0xe9   : > { %v583_v38 = vpop.f32.mrf.mxu0 }
  0xea   : > { %v596_v39 = vpop.f32.mrf.mxu1  ;;  %1413 = vpow2.f32 %v599_v37  ;;  %v1192_v37 = vld [vmem:[#allocation11] sm:$0xf]  ;;  %v1293_v38 = vld [vmem:[#allocation11 + $0x4] sm:$0xf0] }
  0xeb   : > { %v1205_v39 = vor.u32 %v1294_v34, %v1202_v36 }
  0xed   : > { %899 = vmatpush.bf16.msrb.mxu1 %v1205_v39 }
  0xf0   : > { %v1414_v40 = vpop.eup %1413 }
  0xf1   : > { %v601_v41 = vadd.f32 1.0, %v1414_v40  ;;  %v1292_v40 = vld [vmem:[#allocation11 + $0x4] sm:$0xf] }
  0xf3   : > { %1415 = vrcp.f32 %v601_v41  ;;  %v1194_v41 = vld [vmem:[#allocation11 + $0x8] sm:$0xf0] }
  0xf9   : > { %v1416_v42 = vpop.eup %1415 }
  0xfa   : > { %v603_v43 = vpack.c.bf16 %v1416_v42, %v1416_v42  ;;  %v1193_v42 = vor.u32 %v1293_v38, %v1192_v37 }
  0xfc   : > { %680 = vmatmul.bf16.vlgmr.msra.gmra.mxu2 %v603_v43  ;;  %v1197_v43 = vor.u32 %v1292_v40, %v1194_v41  ;;  %887 = vmatpush.bf16.msrb.mxu0 %v1193_v42 }
  0xfe   : > { %900 = vmatpush.bf16.msrb.mxu1 %v1197_v43 }
 0x17f   : > { %v681_v63 = vpop.f32.mrf.mxu2 }
 0x180   : > { %v682_v0 = vadd.f32 %v1411_v61, %v681_v63 }
 0x182   : > { %v685_v1 = vsub.f32 0.0, %v682_v0 }
 0x184   : > { %v686_v2 = vmul.f32 1.442695, %v685_v1 }
 0x186   : > { %1417 = vpow2.f32 %v686_v2 }
 0x187   : > { %v683_v3 = vpop.f32.mrf.mxu2 }
 0x18c   : > { %v1418_v4 = vpop.eup %1417 }
 0x18d   : > { %v688_v5 = vadd.f32 1.0, %v1418_v4 }
 0x18f   : > { %1419 = vrcp.f32 %v688_v5 }
 0x195   : > { %v1420_v6 = vpop.eup %1419 }
 0x196   : > { %v690_v7 = vpack.c.bf16 %v1420_v6, %v1420_v6 }
 0x198   : > { %767 = vmatmul.bf16.vlgmr.msra.gmra.mxu3 %v690_v7 }
 0x21b   : > { %v768_v45 = vpop.f32.mrf.mxu3 }
 0x21c   : > { %v769_v46 = vadd.f32 %v1412_v44, %v768_v45 }
 0x21e   : > { %v772_v47 = vsub.f32 0.0, %v769_v46 }
 0x220   : > { %v773_v48 = vmul.f32 1.442695, %v772_v47 }
 0x222   : > { %1421 = vpow2.f32 %v773_v48 }
 0x223   : > { %v770_v49 = vpop.f32.mrf.mxu3 }
 0x228   : > { %v1422_v50 = vpop.eup %1421 }
 0x229   : > { %v775_v51 = vadd.f32 1.0, %v1422_v50 }
 0x22b   : > { %1423 = vrcp.f32 %v775_v51 }
 0x231   : > { %v1424_v52 = vpop.eup %1423 }
 0x232   : > { %v777_v53 = vpack.c.bf16 %v1424_v52, %v1424_v52 }
 0x234   : > { %888 = vmatmul.bf16.vlgmr.msrb.gmra.mxu0 %v777_v53  ;;  %901 = vmatmul.bf16.vlgmr.msrb.gmra.mxu1 %v777_v53 }
 0x2b1   : > { %v889_v57 = vpop.f32.mrf.mxu0  ;;  %v902_v58 = vpop.f32.mrf.mxu1 }
 0x2b2   : > { %v890_v59 = vadd.f32 %v889_v57, %v796_v55  ;;  %v903_v60 = vadd.f32 %v902_v58, %v797_v56 }
 0x2b4   : > { %v906_v61 = vpack.c.bf16 %v903_v60, %v890_v59 }
 0x2b6   : > { %907 = vst [vmem:[%s431_s1] sm:$0xff] %v906_v61 }
 0x2b7   : > { %1632 = shalt.err (!%p1629_p9)
}
 0x2b8   : > { %1331 = dma.vmem_to_hbm [thread:$0]  (%p1830_p13), %s923_s24, 128, %s925_s3, %s909_s16  }
 0x2b9   : > { %v891_v62 = vpop.f32.mrf.mxu0  ;;  %v904_v63 = vpop.f32.mrf.mxu1 }
 0x2ba PF: > { %s936_s20 = sand.u32 1, %s1671_s30   ;;  %p1952_p10 = scmp.ge.s32.totalorder %s1683_s12, 2 }
 0x2bb   : > { %s937_s15 = scalar_lea.sflag [#allocation4], %s936_s20 }
 0x2bc   : > { %p1354_p11 = pnand %p1952_p10, %p1835_p4 }
 0x2be   : > { %p1355_p0 = pneg %p1354_p11 }
 0x2c0   : > { %1666 = dma.done.wait (%p1355_p0), %s937_s15, 128  }
 0x2c1   : > { %1668 = vsyncadd (%p1355_p0), %s937_s15, 4294967168  ;;  %p25_p13 = scmp.ge.s32.totalorder %s1810_s18, 4   ;;  %s1953_s30 = smov %s1675_s10 }
 0x2c2   : > { %s1954_s10 = smov %s1679_s11  ;;  %s1955_s11 = smov %s1822_s29 }
 0x2c3   : > { %s1956_s12 = smov %s1810_s18  ;;  %27 = sbr.rel (!%p25_p13) target bundleno = 12 (0xc), region = 121 }
 0x2c8   :  { %943 = vsyncpa [#allocation3], 1 }
 0x2c9   :  { %945 = vsyncpa [#allocation3 + $0x1], 1 }
 0x2ca   :  { %946 = vsyncpa [#allocation6], 1 }
 0x2cb   :  { %947 = vsyncpa [#allocation9], 1 }
 0x2cc   :  { %948 = vsyncpa [#allocation12], 1 }
 0x2cd   :  { %949 = vsyncpa [#allocation4], 1 }
 0x2ce   :  { %951 = vsyncpa [#allocation4 + $0x1], 1 }

</bundles_post_ra>
